<compile_context>
chip_gen: v6e
topology: v6e:2x2x1
jax: 0.10.0
libtpu: 0.0.40
codegen_flags: <defaults>
</compile_context>

<pallas_src>
import functools
import math

import numpy as np
import jax
import jax.numpy as jnp
from jax import lax
from jax.experimental import pallas as pl
from jax.experimental.pallas import tpu as pltpu

EPS = 1e-6
KSIZE = 7
PAD = 3
_INV_SQRT2 = np.float32(1.0 / math.sqrt(2.0))

# ----------------------------------------------------------------------------
# pltpu.roll direction probe (tiny one-off kernel run once at import).  The
# depthwise conv needs "shift rows up by k" (result[i] = x[i + k]); we detect
# the roll convention empirically and fall back to slice+concat if sublane
# rolls are unavailable, so the main kernel is correct either way.
# ----------------------------------------------------------------------------
_PROBE_ROWS, _PROBE_COLS, _PROBE_SHIFT = 192, 32, 186


def _roll_probe_kernel(x_ref, o_ref):
    o_ref[...] = pltpu.roll(x_ref[...], _PROBE_SHIFT, axis=0)


def _detect_roll_mode():
    try:
        x = jnp.arange(_PROBE_ROWS * _PROBE_COLS, dtype=jnp.float32)
        x = x.reshape(_PROBE_ROWS, _PROBE_COLS)
        y = pl.pallas_call(
            _roll_probe_kernel,
            out_shape=jax.ShapeDtypeStruct((_PROBE_ROWS, _PROBE_COLS), jnp.float32),
        )(x)
        y = np.asarray(jax.block_until_ready(y))
        xn = np.asarray(x)
        if np.array_equal(y, np.roll(xn, _PROBE_SHIFT, axis=0)):
            return "np"    # pltpu.roll(x, s)[i] == x[i - s]  (jnp.roll convention)
        if np.array_equal(y, np.roll(xn, -_PROBE_SHIFT, axis=0)):
            return "rev"   # pltpu.roll(x, s)[i] == x[i + s]
    except Exception:
        pass
    return "slice"         # no sublane roll available: slice+concat fallback


_ROLL_MODE = _detect_roll_mode()


def _shift_rows_up(x, k, length):
    """result[i] = x[i + k] for i < length - k (wrapped tail rows are unused)."""
    if k == 0:
        return x
    if _ROLL_MODE == "np":
        return pltpu.roll(x, length - k, axis=0)
    if _ROLL_MODE == "rev":
        return pltpu.roll(x, k, axis=0)
    return jnp.concatenate([x[k:], x[:k]], axis=0)


# ----------------------------------------------------------------------------
# Kernel
# ----------------------------------------------------------------------------
def _block_kernel(xp_ref, dww_ref, vecs_ref, w1_ref, w2_ref, o_ref, acc_ref,
                  *, TH, W, Wp, C):
    # xp_ref  : (1, H+6, Wp, C) f32  spatially pre-padded NHWC image (one batch elem)
    # dww_ref : (7, 7, C) f32        depthwise taps
    # vecs_ref: (6, 4C) f32          rows = [dw bias, ln w, ln b, pw1 b, pw2 b, gamma]
    # w1_ref  : (C, 4C) bf16, w2_ref: (4C, C) bf16
    # o_ref   : (1, TH*W, C) f32
    # acc_ref : (TH, Wp, C) f32      VMEM scratch accumulator
    th = pl.program_id(1)
    row0 = pl.multiple_of(th * TH, TH)     # top padded row of this row tile
    L = TH * Wp
    M = TH * W

    # ---- depthwise 7x7 conv, padding=3, groups=C ---------------------------
    acc_ref[...] = jnp.zeros_like(acc_ref)

    def kh_body(kh, carry):
        # rows row0+kh .. row0+kh+TH-1 of the padded image: leading-axis load.
        xkh = xp_ref[0, pl.ds(row0 + kh, TH), :, :]          # (TH, Wp, C)
        xk2 = xkh.reshape(L, C)                              # layout no-op (Wp % 8 == 0)
        wk = dww_ref[kh]                                     # (7, C)
        part = xk2 * wk[0:1]
        for kw in range(1, KSIZE):                           # kw shift runs on the XLU
            part = part + _shift_rows_up(xk2, kw, L) * wk[kw:kw + 1]
        acc_ref[...] += part.reshape(TH, Wp, C)
        return carry

    lax.fori_loop(0, KSIZE, kh_body, 0)

    dwb = vecs_ref[0:1, :C]
    lnw = vecs_ref[1:2, :C]
    lnb = vecs_ref[2:3, :C]
    b1 = vecs_ref[3:4, :]
    b2 = vecs_ref[4:5, :C]
    gamma = vecs_ref[5:6, :C]

    y = acc_ref[:, :W, :] + dwb                              # (TH, W, C)
    y = y.reshape(M, C)

    # ---- LayerNorm over channels (eps=1e-6, biased variance) ---------------
    mean = jnp.mean(y, axis=-1, keepdims=True)
    cen = y - mean
    var = jnp.mean(cen * cen, axis=-1, keepdims=True)
    yn = cen * lax.rsqrt(var + EPS) * lnw + lnb

    # ---- pointwise convs on the MXU (bf16 operands, f32 accumulate) --------
    h = jnp.dot(yn.astype(jnp.bfloat16), w1_ref[...],
                preferred_element_type=jnp.float32) + b1
    h = 0.5 * h * (1.0 + lax.erf(h * _INV_SQRT2))            # exact torch.nn.GELU()
    h2 = jnp.dot(h.astype(jnp.bfloat16), w2_ref[...],
                 preferred_element_type=jnp.float32) + b2

    # ---- layer scale + residual (drop_path = identity) ---------------------
    xmid = xp_ref[0, pl.ds(row0 + PAD, TH), :, :].reshape(L, C)
    xres = _shift_rows_up(xmid, PAD, L).reshape(TH, Wp, C)[:, :W, :].reshape(M, C)
    o_ref[0] = h2 * gamma + xres


# ----------------------------------------------------------------------------
# Wrapper
# ----------------------------------------------------------------------------
def convnext_block(x_nchw, params, *, tile_rows=8):
    """ConvNeXt Block forward. x_nchw: (N, C, H, W) f32 -> (N, C, H, W) f32."""
    dww, dwb, lnw, lnb, w1, b1, w2, b2, gamma = params
    N, C, H, W = x_nchw.shape
    C4 = 4 * C
    TH = min(tile_rows, H)
    if H % TH != 0 or W % 8 != 0:
        # TODO(synk): generalize row tiling / W padding for H % TH != 0, W % 8 != 0.
        raise ValueError("this kernel expects H % tile_rows == 0 and W % 8 == 0")

    x = jnp.transpose(x_nchw, (0, 2, 3, 1)).astype(jnp.float32)       # NHWC
    Hp = H + 2 * PAD
    Wp = ((W + 2 * PAD + 7) // 8) * 8        # round W+6 up to a sublane multiple
    xp = jnp.pad(x, ((0, 0), (PAD, PAD), (PAD, Wp - W - PAD), (0, 0)))

    def padc(v):
        return jnp.pad(v, (0, C4 - v.shape[0]))

    vecs = jnp.stack([padc(dwb), padc(lnw), padc(lnb), b1, padc(b2), padc(gamma)])
    w1b = w1.astype(jnp.bfloat16)
    w2b = w2.astype(jnp.bfloat16)

    nT = H // TH
    M = TH * W
    kernel = functools.partial(_block_kernel, TH=TH, W=W, Wp=Wp, C=C)

    out = pl.pallas_call(
        kernel,
        out_shape=jax.ShapeDtypeStruct((N, H * W, C), jnp.float32),
        grid=(N, nT),
        in_specs=[
            pl.BlockSpec((1, Hp, Wp, C), lambda n, t: (n, 0, 0, 0)),   # padded image
            pl.BlockSpec((KSIZE, KSIZE, C), lambda n, t: (0, 0, 0)),   # dwconv taps
            pl.BlockSpec((6, C4), lambda n, t: (0, 0)),                # stacked vectors
            pl.BlockSpec((C, C4), lambda n, t: (0, 0)),                # pwconv1 weight (bf16)
            pl.BlockSpec((C4, C), lambda n, t: (0, 0)),                # pwconv2 weight (bf16)
        ],
        out_specs=pl.BlockSpec((1, M, C), lambda n, t: (n, t, 0)),
        scratch_shapes=[pltpu.VMEM((TH, Wp, C), jnp.float32)],
        compiler_params=pltpu.CompilerParams(
            dimension_semantics=("parallel", "parallel"),
            vmem_limit_bytes=48 * 1024 * 1024,
        ),
    )(xp, dww, vecs, w1b, w2b)

    out = out.reshape(N, H, W, C)
    return jnp.transpose(out, (0, 3, 1, 2))


# ----------------------------------------------------------------------------
# Pure-JAX reference (mirrors the PyTorch Block; matmuls in bf16 like the kernel)
# ----------------------------------------------------------------------------
def convnext_block_ref(x_nchw, params):
    dww, dwb, lnw, lnb, w1, b1, w2, b2, gamma = params
    x = jnp.transpose(x_nchw, (0, 2, 3, 1)).astype(jnp.float32)
    N, H, W, C = x.shape
    xp = jnp.pad(x, ((0, 0), (PAD, PAD), (PAD, PAD), (0, 0)))
    y = jnp.zeros_like(x)
    for kh in range(KSIZE):
        for kw in range(KSIZE):
            y = y + xp[:, kh:kh + H, kw:kw + W, :] * dww[kh, kw]
    y = y + dwb
    mean = y.mean(-1, keepdims=True)
    var = ((y - mean) ** 2).mean(-1, keepdims=True)
    y = (y - mean) * lax.rsqrt(var + EPS) * lnw + lnb
    h = jnp.dot(y.reshape(N * H * W, C).astype(jnp.bfloat16),
                w1.astype(jnp.bfloat16), preferred_element_type=jnp.float32) + b1
    h = 0.5 * h * (1.0 + lax.erf(h * _INV_SQRT2))
    h2 = jnp.dot(h.astype(jnp.bfloat16), w2.astype(jnp.bfloat16),
                 preferred_element_type=jnp.float32) + b2
    out = h2.reshape(N, H, W, C) * gamma + x
    return jnp.transpose(out, (0, 3, 1, 2))


def init_params(key, dim):
    """Synthetic parameters in kernel-friendly layouts: dww (7,7,C) is the torch
    (C,1,7,7) dwconv weight permuted; w1 (C,4C) / w2 (4C,C) are the 1x1-conv
    weights transposed to right-multiply form."""
    c4 = 4 * dim
    ks = jax.random.split(key, 6)
    dww = jax.random.normal(ks[0], (KSIZE, KSIZE, dim), jnp.float32) * 0.05
    dwb = jax.random.normal(ks[1], (dim,), jnp.float32) * 0.02
    lnw = jnp.ones((dim,), jnp.float32)            # LayerNorm weight = ones
    lnb = jnp.zeros((dim,), jnp.float32)           # LayerNorm bias = zeros
    w1 = jax.random.normal(ks[2], (dim, c4), jnp.float32) * (1.0 / math.sqrt(dim))
    b1 = jax.random.normal(ks[3], (c4,), jnp.float32) * 0.02
    w2 = jax.random.normal(ks[4], (c4, dim), jnp.float32) * (1.0 / math.sqrt(c4))
    b2 = jax.random.normal(ks[5], (dim,), jnp.float32) * 0.02
    # gamma is a learned parameter (the module inits it to 1e-6); use a non-tiny
    # value here so the numerical check actually exercises the MLP branch.
    gamma = jnp.full((dim,), 0.2, jnp.float32)
    return (dww, dwb, lnw, lnb, w1, b1, w2, b2, gamma)


if __name__ == "__main__":
    root = jax.random.PRNGKey(0)
    # Small "module-like" config plus a lane-dense C=128 config.
    for (N, dim, H, W) in [(2, 32, 16, 16), (2, 128, 16, 16)]:
        kx, kp = jax.random.split(jax.random.fold_in(root, dim))
        x = jax.random.normal(kx, (N, dim, H, W), jnp.float32)
        params = init_params(kp, dim)

        out = jax.jit(convnext_block)(x, params)
        out = jax.block_until_ready(out)

        ref = convnext_block_ref(x, params)
        assert out.shape == (N, dim, H, W)
        np.testing.assert_allclose(np.asarray(out), np.asarray(ref),
                                   rtol=1e-3, atol=1e-3)
    print("KERNEL_OK")
</pallas_src>

<mosaic_0001>
module attributes {stable_mosaic.version = 11 : i64} {
  func.func @_roll_probe_kernel(%arg0: memref<192x32xf32, #tpu.memory_space<vmem>>, %arg1: memref<192x32xf32, #tpu.memory_space<vmem>>) attributes {dimension_semantics = [], scalar_prefetch = 0 : i64, scratch_operands = 0 : i64, tpu.core_type = #tpu.core_type<tc>} {
    %c0 = arith.constant 0 : index
    %c0_0 = arith.constant 0 : index
    %0 = vector.load %arg0[%c0, %c0_0] : memref<192x32xf32, #tpu.memory_space<vmem>>, vector<192x32xf32>
    %c186_i32 = arith.constant 186 : i32
    %1 = tpu.dynamic_rotate %0 by %c186_i32 dim 0 : vector<192x32xf32>, i32 -> vector<192x32xf32>
    %c0_1 = arith.constant 0 : index
    %c0_2 = arith.constant 0 : index
    %2 = vector.load %arg1[%c0_1, %c0_2] : memref<192x32xf32, #tpu.memory_space<vmem>>, vector<192x32xf32>
    tpu.vector_store %arg1[%c0_1, %c0_2], %1 {strides = array<i32>} : memref<192x32xf32, #tpu.memory_space<vmem>>, vector<192x32xf32>,
    return
  }
}

module attributes {stable_mosaic.version = 11 : i64} {
  func.func @_block_kernel(%arg0: i32, %arg1: i32, %arg2: memref<1x22x24x32xf32, #tpu.memory_space<vmem>>, %arg3: memref<7x7x32xf32, #tpu.memory_space<vmem>>, %arg4: memref<6x128xf32, #tpu.memory_space<vmem>>, %arg5: memref<32x128xbf16, #tpu.memory_space<vmem>>, %arg6: memref<128x32xbf16, #tpu.memory_space<vmem>>, %arg7: memref<1x128x32xf32, #tpu.memory_space<vmem>>, %arg8: memref<8x24x32xf32, #tpu.memory_space<vmem>>) attributes {dimension_semantics = [#tpu.dimension_semantics<parallel>, #tpu.dimension_semantics<parallel>], iteration_bounds = array<i64: 2, 2>, scalar_prefetch = 0 : i64, scratch_operands = 1 : i64, tpu.core_type = #tpu.core_type<tc>, window_params = [{transform_indices = @transform_0, window_bounds = array<i64: 1, 22, 24, 32>}, {pipeline_mode = #tpu.pipeline_mode<synchronous>, transform_indices = @transform_1, window_bounds = array<i64: 7, 7, 32>}, {pipeline_mode = #tpu.pipeline_mode<synchronous>, transform_indices = @transform_2, window_bounds = array<i64: 6, 128>}, {pipeline_mode = #tpu.pipeline_mode<synchronous>, transform_indices = @transform_3, window_bounds = array<i64: 32, 128>}, {pipeline_mode = #tpu.pipeline_mode<synchronous>, transform_indices = @transform_4, window_bounds = array<i64: 128, 32>}, {transform_indices = @transform_5, window_bounds = array<i64: 1, 128, 32>}]} {
    %c8_i32 = arith.constant 8 : i32
    %0 = arith.muli %arg1, %c8_i32 : i32
    %1 = tpu.assume_multiple %0, 8 : i32
    %cst = arith.constant 0.000000e+00 : f32
    %2 = vector.broadcast %cst : f32 to vector<8x24x32xf32>
    %c0 = arith.constant 0 : index
    %c0_0 = arith.constant 0 : index
    %c0_1 = arith.constant 0 : index
    %3 = vector.load %arg8[%c0, %c0_0, %c0_1] : memref<8x24x32xf32, #tpu.memory_space<vmem>>, vector<8x24x32xf32>
    tpu.vector_store %arg8[%c0, %c0_0, %c0_1], %2 {strides = array<i32>} : memref<8x24x32xf32, #tpu.memory_space<vmem>>, vector<8x24x32xf32>,
    %c0_i32 = arith.constant 0 : i32
    %c7_i32 = arith.constant 7 : i32
    %4 = arith.addi %c0_i32, %c7_i32 : i32
    %c1_i32 = arith.constant 1 : i32
    scf.for %arg9 = %c0_i32 to %4 step %c1_i32  : i32 {
      %71 = arith.addi %1, %arg9 : i32
      %c0_33 = arith.constant 0 : index
      %72 = arith.index_cast %71 : i32 to index
      %c0_34 = arith.constant 0 : index
      %c0_35 = arith.constant 0 : index
      %73 = vector.load %arg2[%c0_33, %72, %c0_34, %c0_35] : memref<1x22x24x32xf32, #tpu.memory_space<vmem>>, vector<1x8x24x32xf32>
      %74 = vector.shape_cast %73 : vector<1x8x24x32xf32> to vector<8x24x32xf32>
      %75 = vector.shape_cast %74 : vector<8x24x32xf32> to vector<192x32xf32>
      %76 = arith.index_cast %arg9 : i32 to index
      %c0_36 = arith.constant 0 : index
      %c0_37 = arith.constant 0 : index
      %77 = vector.load %arg3[%76, %c0_36, %c0_37] : memref<7x7x32xf32, #tpu.memory_space<vmem>>, vector<1x7x32xf32>
      %78 = vector.shape_cast %77 : vector<1x7x32xf32> to vector<7x32xf32>
      %79 = vector.extract_strided_slice %78 {offsets = [0, 0], sizes = [1, 32], strides = [1, 1]} : vector<7x32xf32> to vector<1x32xf32>
      %80 = vector.broadcast %79 : vector<1x32xf32> to vector<192x32xf32>
      %81 = arith.mulf %75, %80 : vector<192x32xf32>
      %82 = vector.extract_strided_slice %75 {offsets = [1, 0], sizes = [191, 32], strides = [1, 1]} : vector<192x32xf32> to vector<191x32xf32>
      %83 = vector.extract_strided_slice %75 {offsets = [0, 0], sizes = [1, 32], strides = [1, 1]} : vector<192x32xf32> to vector<1x32xf32>
      %84 = tpu.concatenate %82, %83 in 0 : vector<191x32xf32>, vector<1x32xf32> -> vector<192x32xf32>
      %85 = vector.extract_strided_slice %78 {offsets = [1, 0], sizes = [1, 32], strides = [1, 1]} : vector<7x32xf32> to vector<1x32xf32>
      %86 = vector.broadcast %85 : vector<1x32xf32> to vector<192x32xf32>
      %87 = arith.mulf %84, %86 : vector<192x32xf32>
      %88 = arith.addf %81, %87 : vector<192x32xf32>
      %89 = vector.extract_strided_slice %75 {offsets = [2, 0], sizes = [190, 32], strides = [1, 1]} : vector<192x32xf32> to vector<190x32xf32>
      %90 = vector.extract_strided_slice %75 {offsets = [0, 0], sizes = [2, 32], strides = [1, 1]} : vector<192x32xf32> to vector<2x32xf32>
      %91 = tpu.concatenate %89, %90 in 0 : vector<190x32xf32>, vector<2x32xf32> -> vector<192x32xf32>
      %92 = vector.extract_strided_slice %78 {offsets = [2, 0], sizes = [1, 32], strides = [1, 1]} : vector<7x32xf32> to vector<1x32xf32>
      %93 = vector.broadcast %92 : vector<1x32xf32> to vector<192x32xf32>
      %94 = arith.mulf %91, %93 : vector<192x32xf32>
      %95 = arith.addf %88, %94 : vector<192x32xf32>
      %96 = vector.extract_strided_slice %75 {offsets = [3, 0], sizes = [189, 32], strides = [1, 1]} : vector<192x32xf32> to vector<189x32xf32>
      %97 = vector.extract_strided_slice %75 {offsets = [0, 0], sizes = [3, 32], strides = [1, 1]} : vector<192x32xf32> to vector<3x32xf32>
      %98 = tpu.concatenate %96, %97 in 0 : vector<189x32xf32>, vector<3x32xf32> -> vector<192x32xf32>
      %99 = vector.extract_strided_slice %78 {offsets = [3, 0], sizes = [1, 32], strides = [1, 1]} : vector<7x32xf32> to vector<1x32xf32>
      %100 = vector.broadcast %99 : vector<1x32xf32> to vector<192x32xf32>
      %101 = arith.mulf %98, %100 : vector<192x32xf32>
      %102 = arith.addf %95, %101 : vector<192x32xf32>
      %103 = vector.extract_strided_slice %75 {offsets = [4, 0], sizes = [188, 32], strides = [1, 1]} : vector<192x32xf32> to vector<188x32xf32>
      %104 = vector.extract_strided_slice %75 {offsets = [0, 0], sizes = [4, 32], strides = [1, 1]} : vector<192x32xf32> to vector<4x32xf32>
      %105 = tpu.concatenate %103, %104 in 0 : vector<188x32xf32>, vector<4x32xf32> -> vector<192x32xf32>
      %106 = vector.extract_strided_slice %78 {offsets = [4, 0], sizes = [1, 32], strides = [1, 1]} : vector<7x32xf32> to vector<1x32xf32>
      %107 = vector.broadcast %106 : vector<1x32xf32> to vector<192x32xf32>
      %108 = arith.mulf %105, %107 : vector<192x32xf32>
      %109 = arith.addf %102, %108 : vector<192x32xf32>
      %110 = vector.extract_strided_slice %75 {offsets = [5, 0], sizes = [187, 32], strides = [1, 1]} : vector<192x32xf32> to vector<187x32xf32>
      %111 = vector.extract_strided_slice %75 {offsets = [0, 0], sizes = [5, 32], strides = [1, 1]} : vector<192x32xf32> to vector<5x32xf32>
      %112 = tpu.concatenate %110, %111 in 0 : vector<187x32xf32>, vector<5x32xf32> -> vector<192x32xf32>
      %113 = vector.extract_strided_slice %78 {offsets = [5, 0], sizes = [1, 32], strides = [1, 1]} : vector<7x32xf32> to vector<1x32xf32>
      %114 = vector.broadcast %113 : vector<1x32xf32> to vector<192x32xf32>
      %115 = arith.mulf %112, %114 : vector<192x32xf32>
      %116 = arith.addf %109, %115 : vector<192x32xf32>
      %117 = vector.extract_strided_slice %75 {offsets = [6, 0], sizes = [186, 32], strides = [1, 1]} : vector<192x32xf32> to vector<186x32xf32>
      %118 = vector.extract_strided_slice %75 {offsets = [0, 0], sizes = [6, 32], strides = [1, 1]} : vector<192x32xf32> to vector<6x32xf32>
      %119 = tpu.concatenate %117, %118 in 0 : vector<186x32xf32>, vector<6x32xf32> -> vector<192x32xf32>
      %120 = vector.extract_strided_slice %78 {offsets = [6, 0], sizes = [1, 32], strides = [1, 1]} : vector<7x32xf32> to vector<1x32xf32>
      %121 = vector.broadcast %120 : vector<1x32xf32> to vector<192x32xf32>
      %122 = arith.mulf %119, %121 : vector<192x32xf32>
      %123 = arith.addf %116, %122 : vector<192x32xf32>
      %c0_38 = arith.constant 0 : index
      %c0_39 = arith.constant 0 : index
      %c0_40 = arith.constant 0 : index
      %124 = vector.load %arg8[%c0_38, %c0_39, %c0_40] : memref<8x24x32xf32, #tpu.memory_space<vmem>>, vector<8x24x32xf32>
      %125 = vector.shape_cast %123 : vector<192x32xf32> to vector<8x24x32xf32>
      %126 = arith.addf %124, %125 : vector<8x24x32xf32>
      %c0_41 = arith.constant 0 : index
      %c0_42 = arith.constant 0 : index
      %c0_43 = arith.constant 0 : index
      %127 = vector.load %arg8[%c0_41, %c0_42, %c0_43] : memref<8x24x32xf32, #tpu.memory_space<vmem>>, vector<8x24x32xf32>
      tpu.vector_store %arg8[%c0_41, %c0_42, %c0_43], %126 {strides = array<i32>} : memref<8x24x32xf32, #tpu.memory_space<vmem>>, vector<8x24x32xf32>,
    }
    %c7_i32_2 = arith.constant 7 : i32
    %c0_3 = arith.constant 0 : index
    %c0_4 = arith.constant 0 : index
    %5 = vector.load %arg4[%c0_3, %c0_4] : memref<6x128xf32, #tpu.memory_space<vmem>>, vector<1x32xf32>
    %c1 = arith.constant 1 : index
    %c0_5 = arith.constant 0 : index
    %6 = vector.load %arg4[%c1, %c0_5] : memref<6x128xf32, #tpu.memory_space<vmem>>, vector<1x32xf32>
    %c2 = arith.constant 2 : index
    %c0_6 = arith.constant 0 : index
    %7 = vector.load %arg4[%c2, %c0_6] : memref<6x128xf32, #tpu.memory_space<vmem>>, vector<1x32xf32>
    %c3 = arith.constant 3 : index
    %c0_7 = arith.constant 0 : index
    %8 = vector.load %arg4[%c3, %c0_7] : memref<6x128xf32, #tpu.memory_space<vmem>>, vector<1x128xf32>
    %c4 = arith.constant 4 : index
    %c0_8 = arith.constant 0 : index
    %9 = vector.load %arg4[%c4, %c0_8] : memref<6x128xf32, #tpu.memory_space<vmem>>, vector<1x32xf32>
    %c5 = arith.constant 5 : index
    %c0_9 = arith.constant 0 : index
    %10 = vector.load %arg4[%c5, %c0_9] : memref<6x128xf32, #tpu.memory_space<vmem>>, vector<1x32xf32>
    %c0_10 = arith.constant 0 : index
    %c0_11 = arith.constant 0 : index
    %c0_12 = arith.constant 0 : index
    %11 = vector.load %arg8[%c0_10, %c0_11, %c0_12] : memref<8x24x32xf32, #tpu.memory_space<vmem>>, vector<8x16x32xf32>
    %12 = vector.shape_cast %5 : vector<1x32xf32> to vector<1x1x32xf32>
    %13 = vector.broadcast %12 : vector<1x1x32xf32> to vector<8x16x32xf32>
    %14 = arith.addf %11, %13 : vector<8x16x32xf32>
    %15 = vector.shape_cast %14 : vector<8x16x32xf32> to vector<128x32xf32>
    %cst_13 = arith.constant dense<0.000000e+00> : vector<128xf32>
    %16 = vector.multi_reduction <add>, %15, %cst_13 [1] : vector<128x32xf32> to vector<128xf32>
    %17 = vector.shape_cast %16 : vector<128xf32> to vector<128x1xf32>
    %cst_14 = arith.constant 3.200000e+01 : f32
    %18 = vector.broadcast %cst_14 : f32 to vector<128x1xf32>
    %19 = arith.divf %17, %18 : vector<128x1xf32>
    %20 = vector.broadcast %19 : vector<128x1xf32> to vector<128x32xf32>
    %21 = arith.subf %15, %20 : vector<128x32xf32>
    %22 = arith.mulf %21, %21 : vector<128x32xf32>
    %cst_15 = arith.constant dense<0.000000e+00> : vector<128xf32>
    %23 = vector.multi_reduction <add>, %22, %cst_15 [1] : vector<128x32xf32> to vector<128xf32>
    %24 = vector.shape_cast %23 : vector<128xf32> to vector<128x1xf32>
    %cst_16 = arith.constant 3.200000e+01 : f32
    %25 = vector.broadcast %cst_16 : f32 to vector<128x1xf32>
    %26 = arith.divf %24, %25 : vector<128x1xf32>
    %cst_17 = arith.constant 9.99999997E-7 : f32
    %27 = vector.broadcast %cst_17 : f32 to vector<128x1xf32>
    %28 = arith.addf %26, %27 : vector<128x1xf32>
    %29 = math.rsqrt %28 : vector<128x1xf32>
    %30 = vector.broadcast %29 : vector<128x1xf32> to vector<128x32xf32>
    %31 = arith.mulf %21, %30 : vector<128x32xf32>
    %32 = vector.broadcast %6 : vector<1x32xf32> to vector<128x32xf32>
    %33 = arith.mulf %31, %32 : vector<128x32xf32>
    %34 = vector.broadcast %7 : vector<1x32xf32> to vector<128x32xf32>
    %35 = arith.addf %33, %34 : vector<128x32xf32>
    %36 = arith.truncf %35 : vector<128x32xf32> to vector<128x32xbf16>
    %c0_18 = arith.constant 0 : index
    %c0_19 = arith.constant 0 : index
    %37 = vector.load %arg5[%c0_18, %c0_19] : memref<32x128xbf16, #tpu.memory_space<vmem>>, vector<32x128xbf16>
    %cst_20 = arith.constant dense<0.000000e+00> : vector<128x128xf32>
    %38 = tpu.matmul %36, %37, %cst_20 {dimension_numbers = #tpu.dot_dimension_numbers<[1], [0], [0], [1], [0, 0, 1, 1], [], []>} : vector<128x32xbf16>, vector<32x128xbf16>, vector<128x128xf32> -> vector<128x128xf32>
    %39 = vector.broadcast %8 : vector<1x128xf32> to vector<128x128xf32>
    %40 = arith.addf %38, %39 : vector<128x128xf32>
    %cst_21 = arith.constant 5.000000e-01 : f32
    %41 = vector.broadcast %cst_21 : f32 to vector<128x128xf32>
    %42 = arith.mulf %41, %40 : vector<128x128xf32>
    %cst_22 = arith.constant 0.707106769 : f32
    %43 = vector.broadcast %cst_22 : f32 to vector<128x128xf32>
    %44 = arith.mulf %40, %43 : vector<128x128xf32>
    %45 = math.erf %44 : vector<128x128xf32>
    %cst_23 = arith.constant 1.000000e+00 : f32
    %46 = vector.broadcast %cst_23 : f32 to vector<128x128xf32>
    %47 = arith.addf %46, %45 : vector<128x128xf32>
    %48 = arith.mulf %42, %47 : vector<128x128xf32>
    %49 = arith.truncf %48 : vector<128x128xf32> to vector<128x128xbf16>
    %c0_24 = arith.constant 0 : index
    %c0_25 = arith.constant 0 : index
    %50 = vector.load %arg6[%c0_24, %c0_25] : memref<128x32xbf16, #tpu.memory_space<vmem>>, vector<128x32xbf16>
    %cst_26 = arith.constant dense<0.000000e+00> : vector<128x32xf32>
    %51 = tpu.matmul %49, %50, %cst_26 {dimension_numbers = #tpu.dot_dimension_numbers<[1], [0], [0], [1], [0, 0, 1, 1], [], []>} : vector<128x128xbf16>, vector<128x32xbf16>, vector<128x32xf32> -> vector<128x32xf32>
    %52 = vector.broadcast %9 : vector<1x32xf32> to vector<128x32xf32>
    %53 = arith.addf %51, %52 : vector<128x32xf32>
    %c3_i32 = arith.constant 3 : i32
    %54 = arith.addi %1, %c3_i32 : i32
    %c0_27 = arith.constant 0 : index
    %55 = arith.index_cast %54 : i32 to index
    %c0_28 = arith.constant 0 : index
    %c0_29 = arith.constant 0 : index
    %56 = vector.load %arg2[%c0_27, %55, %c0_28, %c0_29] : memref<1x22x24x32xf32, #tpu.memory_space<vmem>>, vector<1x8x24x32xf32>
    %57 = vector.shape_cast %56 : vector<1x8x24x32xf32> to vector<8x24x32xf32>
    %58 = vector.shape_cast %57 : vector<8x24x32xf32> to vector<192x32xf32>
    %59 = vector.extract_strided_slice %58 {offsets = [3, 0], sizes = [189, 32], strides = [1, 1]} : vector<192x32xf32> to vector<189x32xf32>
    %60 = vector.extract_strided_slice %58 {offsets = [0, 0], sizes = [3, 32], strides = [1, 1]} : vector<192x32xf32> to vector<3x32xf32>
    %61 = tpu.concatenate %59, %60 in 0 : vector<189x32xf32>, vector<3x32xf32> -> vector<192x32xf32>
    %62 = vector.shape_cast %61 : vector<192x32xf32> to vector<8x24x32xf32>
    %63 = vector.extract_strided_slice %62 {offsets = [0, 0, 0], sizes = [8, 16, 32], strides = [1, 1, 1]} : vector<8x24x32xf32> to vector<8x16x32xf32>
    %64 = vector.shape_cast %63 : vector<8x16x32xf32> to vector<128x32xf32>
    %65 = vector.broadcast %10 : vector<1x32xf32> to vector<128x32xf32>
    %66 = arith.mulf %53, %65 : vector<128x32xf32>
    %67 = arith.addf %66, %64 : vector<128x32xf32>
    %c0_30 = arith.constant 0 : index
    %c0_31 = arith.constant 0 : index
    %c0_32 = arith.constant 0 : index
    %68 = vector.load %arg7[%c0_30, %c0_31, %c0_32] : memref<1x128x32xf32, #tpu.memory_space<vmem>>, vector<1x128x32xf32>
    %69 = vector.shape_cast %68 : vector<1x128x32xf32> to vector<128x32xf32>
    %70 = vector.shape_cast %67 : vector<128x32xf32> to vector<1x128x32xf32>
    tpu.vector_store %arg7[%c0_30, %c0_31, %c0_32], %70 {strides = array<i32>} : memref<1x128x32xf32, #tpu.memory_space<vmem>>, vector<1x128x32xf32>,
    return
  }
  func.func @transform_0(%arg0: i32, %arg1: i32) -> (i32, i32, i32, i32) {
    %c0_i32 = arith.constant 0 : i32
    %c0_i32_0 = arith.constant 0 : i32
    %c0_i32_1 = arith.constant 0 : i32
    %c0_i32_2 = arith.constant 0 : i32
    return %arg0, %c0_i32, %c0_i32_0, %c0_i32_1 : i32, i32, i32, i32
  }
  func.func @transform_1(%arg0: i32, %arg1: i32) -> (i32, i32, i32) {
    %c0_i32 = arith.constant 0 : i32
    %c0_i32_0 = arith.constant 0 : i32
    %c0_i32_1 = arith.constant 0 : i32
    %c0_i32_2 = arith.constant 0 : i32
    return %c0_i32, %c0_i32_0, %c0_i32_1 : i32, i32, i32
  }
  func.func @transform_2(%arg0: i32, %arg1: i32) -> (i32, i32) {
    %c0_i32 = arith.constant 0 : i32
    %c0_i32_0 = arith.constant 0 : i32
    %c0_i32_1 = arith.constant 0 : i32
    return %c0_i32, %c0_i32_0 : i32, i32
  }
  func.func @transform_3(%arg0: i32, %arg1: i32) -> (i32, i32) {
    %c0_i32 = arith.constant 0 : i32
    %c0_i32_0 = arith.constant 0 : i32
    %c0_i32_1 = arith.constant 0 : i32
    return %c0_i32, %c0_i32_0 : i32, i32
  }
  func.func @transform_4(%arg0: i32, %arg1: i32) -> (i32, i32) {
    %c0_i32 = arith.constant 0 : i32
    %c0_i32_0 = arith.constant 0 : i32
    %c0_i32_1 = arith.constant 0 : i32
    return %c0_i32, %c0_i32_0 : i32, i32
  }
  func.func @transform_5(%arg0: i32, %arg1: i32) -> (i32, i32, i32) {
    %c0_i32 = arith.constant 0 : i32
    %c0_i32_0 = arith.constant 0 : i32
    return %arg0, %arg1, %c0_i32 : i32, i32, i32
  }
}

</mosaic_0001>

<bundles_post_ra>
// kernel: tpu_custom_call.1
= control target key start
LH: loop header
LB: loop body
LE: loop exit
PB: predicated region body
PF: predicated region fallthrough
CT: control target
= control target key end

     0   :  { %v56_v0 = vlaneseq  ;;  %vm83_vm0 = vcmask 261120   ;;  %s348_s0 = inlined_call_operand.vmem [shape: f32[192,32], index: 0, kind: input, shape index: {}]   ;;  %s349_s1 = inlined_call_operand.vmem [shape: f32[192,32], index: 1, kind: output, shape index: {}]  }
   0x1   :  { %v125_v1 = vld [vmem:[%s348_s0] sm:$0xff]  ;;  %v9_v2 = vld [vmem:[%s348_s0 + $0x8] sm:$0xff]  ;;  %v10_v3 = vld [vmem:[%s348_s0 + $0x10] sm:$0xff] }
   0x2   :  { %v32_v4 = vrot.slane %v125_v1, 6  ;;  %v33_v5 = vrot.slane %v9_v2, 6  ;;  %v134_v6 = vshrl.u32 %v56_v0, 7  ;;  %v34_v7 = vrot.slane %v10_v3, 6  ;;  %v11_v8 = vld [vmem:[%s348_s0 + $0x18] sm:$0xff]  ;;  %v12_v9 = vld [vmem:[%s348_s0 + $0x20] sm:$0xff] }
   0x3   :  { %v35_v10 = vrot.slane %v11_v8, 6  ;;  %v36_v11 = vrot.slane %v12_v9, 6  ;;  %v13_v12 = vld [vmem:[%s348_s0 + $0x28] sm:$0xff]  ;;  %v14_v13 = vld [vmem:[%s348_s0 + $0x30] sm:$0xff]  ;;  %v15_v14 = vld [vmem:[%s348_s0 + $0x38] sm:$0xff] }
   0x4   :  { %vm58_vm1 = vcmp.lt.s32.totalorder %v134_v6, 2  ;;  %v37_v15 = vrot.slane %v13_v12, 6  ;;  %v38_v16 = vrot.slane %v14_v13, 6  ;;  %v39_v17 = vrot.slane %v15_v14, 6  ;;  %v16_v18 = vld [vmem:[%s348_s0 + $0x40] sm:$0xff]  ;;  %v17_v19 = vld [vmem:[%s348_s0 + $0x48] sm:$0xff] }
   0x5   :  { %v81_v20 = vsel %vm58_vm1, %v32_v4, %v33_v5  ;;  %v80_v21 = vsel %vm58_vm1, %v33_v5, %v34_v7  ;;  %v79_v22 = vsel %vm58_vm1, %v34_v7, %v35_v10  ;;  %v78_v23 = vsel %vm58_vm1, %v35_v10, %v36_v11  ;;  %v18_v24 = vld [vmem:[%s348_s0 + $0x50] sm:$0xff]  ;;  %v19_v25 = vld [vmem:[%s348_s0 + $0x58] sm:$0xff]  ;;  %v20_v26 = vld [vmem:[%s348_s0 + $0x60] sm:$0xff] }
   0x6   :  { %84 = vst.msk [vmem:[%s349_s1] sm:$0xff] %vm83_vm0, %v81_v20  ;;  %85 = vst.msk [vmem:[%s349_s1 + $0x8] sm:$0xff] %vm83_vm0, %v80_v21  ;;  %v77_v27 = vsel %vm58_vm1, %v36_v11, %v37_v15  ;;  %v76_v28 = vsel %vm58_vm1, %v37_v15, %v38_v16  ;;  %v75_v29 = vsel %vm58_vm1, %v38_v16, %v39_v17  ;;  %v40_v30 = vrot.slane %v16_v18, 6  ;;  %v21_v31 = vld [vmem:[%s348_s0 + $0x68] sm:$0xff]  ;;  %v22_v32 = vld [vmem:[%s348_s0 + $0x70] sm:$0xff] }
   0x7   :  { %86 = vst.msk [vmem:[%s349_s1 + $0x10] sm:$0xff] %vm83_vm0, %v79_v22  ;;  %87 = vst.msk [vmem:[%s349_s1 + $0x18] sm:$0xff] %vm83_vm0, %v78_v23  ;;  %v23_v33 = vld [vmem:[%s348_s0 + $0x78] sm:$0xff]  ;;  %v41_v34 = vrot.slane %v17_v19, 6  ;;  %v42_v35 = vrot.slane %v18_v24, 6  ;;  %v43_v36 = vrot.slane %v19_v25, 6 }
   0x8   :  { %88 = vst.msk [vmem:[%s349_s1 + $0x20] sm:$0xff] %vm83_vm0, %v77_v27  ;;  %89 = vst.msk [vmem:[%s349_s1 + $0x28] sm:$0xff] %vm83_vm0, %v76_v28  ;;  %v44_v37 = vrot.slane %v20_v26, 6  ;;  %v24_v38 = vld [vmem:[%s348_s0 + $0x80] sm:$0xff]  ;;  %v25_v39 = vld [vmem:[%s348_s0 + $0x88] sm:$0xff]  ;;  %v74_v40 = vsel %vm58_vm1, %v39_v17, %v40_v30  ;;  %v45_v41 = vrot.slane %v21_v31, 6 }
   0x9   :  { %90 = vst.msk [vmem:[%s349_s1 + $0x30] sm:$0xff] %vm83_vm0, %v75_v29  ;;  %v46_v42 = vrot.slane %v22_v32, 6  ;;  %v47_v43 = vrot.slane %v23_v33, 6  ;;  %v26_v44 = vld [vmem:[%s348_s0 + $0x90] sm:$0xff]  ;;  %v27_v45 = vld [vmem:[%s348_s0 + $0x98] sm:$0xff]  ;;  %v28_v46 = vld [vmem:[%s348_s0 + $0xa0] sm:$0xff]  ;;  %v73_v47 = vsel %vm58_vm1, %v40_v30, %v41_v34  ;;  %v72_v48 = vsel %vm58_vm1, %v41_v34, %v42_v35 }
   0xa   :  { %91 = vst.msk [vmem:[%s349_s1 + $0x38] sm:$0xff] %vm83_vm0, %v74_v40  ;;  %v71_v49 = vsel %vm58_vm1, %v42_v35, %v43_v36  ;;  %v70_v50 = vsel %vm58_vm1, %v43_v36, %v44_v37  ;;  %v29_v51 = vld [vmem:[%s348_s0 + $0xa8] sm:$0xff]  ;;  %v30_v52 = vld [vmem:[%s348_s0 + $0xb0] sm:$0xff]  ;;  %v31_v53 = vld [vmem:[%s348_s0 + $0xb8] sm:$0xff]  ;;  %v69_v54 = vsel %vm58_vm1, %v44_v37, %v45_v41  ;;  %v48_v57 = vrot.slane %v24_v38, 6 }
   0xb   :  { %92 = vst.msk [vmem:[%s349_s1 + $0x40] sm:$0xff] %vm83_vm0, %v73_v47  ;;  %93 = vst.msk [vmem:[%s349_s1 + $0x48] sm:$0xff] %vm83_vm0, %v72_v48  ;;  %v68_v55 = vsel %vm58_vm1, %v45_v41, %v46_v42  ;;  %v67_v56 = vsel %vm58_vm1, %v46_v42, %v47_v43  ;;  %v49_v58 = vrot.slane %v25_v39, 6  ;;  %v50_v59 = vrot.slane %v26_v44, 6 }
   0xc   :  { %94 = vst.msk [vmem:[%s349_s1 + $0x50] sm:$0xff] %vm83_vm0, %v71_v49  ;;  %95 = vst.msk [vmem:[%s349_s1 + $0x58] sm:$0xff] %vm83_vm0, %v70_v50  ;;  %v51_v60 = vrot.slane %v27_v45, 6  ;;  %v52_v61 = vrot.slane %v28_v46, 6  ;;  %v66_v62 = vsel %vm58_vm1, %v47_v43, %v48_v57  ;;  %v53_v63 = vrot.slane %v29_v51, 6 }
   0xd   :  { %96 = vst.msk [vmem:[%s349_s1 + $0x60] sm:$0xff] %vm83_vm0, %v69_v54  ;;  %97 = vst.msk [vmem:[%s349_s1 + $0x68] sm:$0xff] %vm83_vm0, %v68_v55  ;;  %v54_v0 = vrot.slane %v30_v52, 6  ;;  %v55_v2 = vrot.slane %v31_v53, 6  ;;  %v65_v3 = vsel %vm58_vm1, %v48_v57, %v49_v58  ;;  %v64_v5 = vsel %vm58_vm1, %v49_v58, %v50_v59 }
   0xe   :  { %98 = vst.msk [vmem:[%s349_s1 + $0x70] sm:$0xff] %vm83_vm0, %v67_v56  ;;  %99 = vst.msk [vmem:[%s349_s1 + $0x78] sm:$0xff] %vm83_vm0, %v66_v62  ;;  %v63_v7 = vsel %vm58_vm1, %v50_v59, %v51_v60  ;;  %v62_v8 = vsel %vm58_vm1, %v51_v60, %v52_v61  ;;  %v61_v9 = vsel %vm58_vm1, %v52_v61, %v53_v63 }
   0xf   :  { %100 = vst.msk [vmem:[%s349_s1 + $0x80] sm:$0xff] %vm83_vm0, %v65_v3  ;;  %101 = vst.msk [vmem:[%s349_s1 + $0x88] sm:$0xff] %vm83_vm0, %v64_v5  ;;  %v60_v10 = vsel %vm58_vm1, %v53_v63, %v54_v0  ;;  %v59_v11 = vsel %vm58_vm1, %v54_v0, %v55_v2  ;;  %v82_v12 = vsel %vm58_vm1, %v55_v2, %v32_v4 }
  0x10   :  { %102 = vst.msk [vmem:[%s349_s1 + $0x90] sm:$0xff] %vm83_vm0, %v63_v7  ;;  %103 = vst.msk [vmem:[%s349_s1 + $0x98] sm:$0xff] %vm83_vm0, %v62_v8 }
  0x11   :  { %104 = vst.msk [vmem:[%s349_s1 + $0xa0] sm:$0xff] %vm83_vm0, %v61_v9  ;;  %105 = vst.msk [vmem:[%s349_s1 + $0xa8] sm:$0xff] %vm83_vm0, %v60_v10 }
  0x12   :  { %106 = vst.msk [vmem:[%s349_s1 + $0xb0] sm:$0xff] %vm83_vm0, %v59_v11  ;;  %107 = vst.msk [vmem:[%s349_s1 + $0xb8] sm:$0xff] %vm83_vm0, %v82_v12 }

// kernel: convnext_block.1
= control target key start
LH: loop header
LB: loop body
LE: loop exit
PB: predicated region body
PF: predicated region fallthrough
CT: control target
= control target key end

     0   :  { %10 = vsyncpa [#allocation4], 0  ;;  %s3804_s0 = inlined_call_operand.vmem [shape: f32[2,22,24,32], index: 0, kind: input, shape index: {}]   ;;  %s3805_s1 = inlined_call_operand.vmem [shape: f32[7,7,32], index: 1, kind: input, shape index: {}]   ;;  %s3806_s2 = inlined_call_operand.vmem [shape: f32[6,128], index: 2, kind: input, shape index: {}]   ;;  %s3807_s3 = inlined_call_operand.vmem [shape: bf16[32,128], index: 3, kind: input, shape index: {}]   ;;  %s3808_s4 = inlined_call_operand.vmem [shape: bf16[128,32], index: 4, kind: input, shape index: {}]   ;;  %s3809_s5 = inlined_call_operand.hbm [shape: f32[2,256,32], index: 5, kind: output, shape index: {}]  }
   0x1   :  { %12 = vsyncpa [#allocation4 + $0x1], 0  ;;  %s2593_s18 = smov 0   ;;  %s2595_s19 = smov 0  }
   0x2   :  { %s2597_s20 = smov 0   ;;  %s2599_s21 = smov 0  }
   0x3   :  { %s2601_s22 = smov 0   ;;  %s2603_s23 = smov 0  }
   0x4   :  { %s2605_s24 = smov 0   ;;  %s2607_s25 = smov 0  }
   0x5 LB: > { %s2141_s26 = sadd.s32 4294967295, %s2553_s25   ;;  %s2142_s27 = sadd.s32 4294967294, %s2553_s25   ;;  %s2553_s25 = sphi %s2607_s25, %s18_s25   ;;  %s2549_s24 = sphi %s2605_s24, %s3818_s24   ;;  %s2545_s23 = sphi %s2603_s23, %s3817_s23   ;;  %s2541_s22 = sphi %s2601_s22, %s3816_s22   ;;  %s2537_s21 = sphi %s2599_s21, %s3815_s21   ;;  %s2533_s20 = sphi %s2597_s20, %s3814_s20   ;;  %s2529_s19 = sphi %s2595_s19, %s3813_s19   ;;  %s2525_s18 = sphi %s2593_s18, %s3812_s18  }
   0x6   : > { %s27_s28 = sadd.s32 1, %s2545_s23  ;;  %s30_s29 = sadd.s32 1, %s2549_s24 }
   0x7   : > { %p28_p0 = scmp.ge.s32.totalorder %s27_s28, 2  ;;  %p159_p1 = scmp.ne.s32.totalorder %s2533_s20, %s2529_s19 }
   0x8   : > { %p160_p2 = scmp.eq.s32.totalorder %s2141_s26, 3  ;;  %p165_p5 = scmp.ne.s32.totalorder %s2529_s19, %s2525_s18 }
   0x9   : > { %s3820_s28 = smov (%p28_p0, %s27_s28), 0  ;;  %s3822_s29 = smov (!%p28_p0, %s30_s29), %s2549_s24 }
   0xa   : > { %s145_s30 = ssub.s32 %s2545_s23, %s3820_s28  ;;  %p2644_p3 = por %p160_p2, %p159_p1 }
   0xb   : > { %p32_p4 = scmp.ge.s32.totalorder %s3822_s29, 2  ;;  %p166_p6 = scmp.eq.s32.totalorder %s2142_s27, 3 }
   0xc   : > { %p2145_p7 = scmp.ge.s32.totalorder %s2553_s25, 1  ;;  %p204_p9 = scmp.lt.s32.totalorder %s2553_s25, 5 }
   0xd   : > { %s3824_s29 = smov (%p32_p4, %s3822_s29), 0  ;;  %p2653_p8 = por %p166_p6, %p165_p5 }
   0xe   : > { %s144_s8 = ssub.s32 %s2549_s24, %s3824_s29  ;;  %s149_s9 = sadd.s32 1, %s2533_s20 }
   0xf   : > { %s146_s10 = sor.u32 %s145_s30, %s144_s8  ;;  %p205_p10 = pnand %p2145_p7, %p204_p9 }
  0x10   : > { %p147_p11 = scmp.eq.s32.totalorder %s146_s10, 0  ;;  %s229_s12 = sand.u32 (!%p205_p10), 1, %s2529_s19  }
  0x11   : > { %208 = sbr.rel (%p205_p10) target bundleno = 985 (0x3d9), region = 40  ;;  %p232_p12 = scmp.lt.s32.totalorder (!%p205_p10), %s2541_s22, 1 }
  0x12   : > { %s2662_s11 = scalar_select %p147_p11, %s2533_s20, %s149_s9  }
  0x13   : > { %s2668_s13 = sshll.u32 (!%p205_p10), %s229_s12, 7  ;;  %s2148_s14 = sshll.u32 (!%p205_p10), %s2537_s21, 3 }
  0x14   : > { %s2704_s30 = scalar_lea.vmem (!%p205_p10), [#allocation3], %s2668_s13  ;;  %s2706_s8 = smov (!%p205_p10), 0  }
  0x16   : > { %vm240_vm0 = vcmask 261120   ;;  %v2559_v0 = vmov 0.0   ;;  %s233_s15 = scalar_select %p232_p12, %s2541_s22, 1 }
  0x17   : > { %241 = vst.msk [vmem:[#allocation2] sm:$0xff] %vm240_vm0, %v2559_v0  ;;  %242 = vst.msk [vmem:[#allocation2 + $0x8] sm:$0xff] %vm240_vm0, %v2559_v0 }
  0x18   : > { %243 = vst.msk [vmem:[#allocation2 + $0x10] sm:$0xff] %vm240_vm0, %v2559_v0  ;;  %244 = vst.msk [vmem:[#allocation2 + $0x18] sm:$0xff] %vm240_vm0, %v2559_v0  ;;  %s2300_s16 = smul.u32 528, %s233_s15 }
  0x19   : > { %245 = vst.msk [vmem:[#allocation2 + $0x20] sm:$0xff] %vm240_vm0, %v2559_v0  ;;  %246 = vst.msk [vmem:[#allocation2 + $0x28] sm:$0xff] %vm240_vm0, %v2559_v0 }
  0x1a   : > { %247 = vst.msk [vmem:[#allocation2 + $0x30] sm:$0xff] %vm240_vm0, %v2559_v0  ;;  %248 = vst.msk [vmem:[#allocation2 + $0x38] sm:$0xff] %vm240_vm0, %v2559_v0  ;;  %s2701_s27 = scalar_lea.vmem %s3804_s0, %s2300_s16 }
  0x1b   : > { %249 = vst.msk [vmem:[#allocation2 + $0x40] sm:$0xff] %vm240_vm0, %v2559_v0  ;;  %250 = vst.msk [vmem:[#allocation2 + $0x48] sm:$0xff] %vm240_vm0, %v2559_v0 }
  0x1c   : > { %251 = vst.msk [vmem:[#allocation2 + $0x50] sm:$0xff] %vm240_vm0, %v2559_v0  ;;  %252 = vst.msk [vmem:[#allocation2 + $0x58] sm:$0xff] %vm240_vm0, %v2559_v0 }
  0x1d   : > { %253 = vst.msk [vmem:[#allocation2 + $0x60] sm:$0xff] %vm240_vm0, %v2559_v0  ;;  %254 = vst.msk [vmem:[#allocation2 + $0x68] sm:$0xff] %vm240_vm0, %v2559_v0 }
  0x1e   : > { %255 = vst.msk [vmem:[#allocation2 + $0x70] sm:$0xff] %vm240_vm0, %v2559_v0  ;;  %256 = vst.msk [vmem:[#allocation2 + $0x78] sm:$0xff] %vm240_vm0, %v2559_v0 }
  0x1f   : > { %257 = vst.msk [vmem:[#allocation2 + $0x80] sm:$0xff] %vm240_vm0, %v2559_v0  ;;  %258 = vst.msk [vmem:[#allocation2 + $0x88] sm:$0xff] %vm240_vm0, %v2559_v0 }
  0x20   : > { %259 = vst.msk [vmem:[#allocation2 + $0x90] sm:$0xff] %vm240_vm0, %v2559_v0  ;;  %260 = vst.msk [vmem:[#allocation2 + $0x98] sm:$0xff] %vm240_vm0, %v2559_v0 }
  0x21   : > { %261 = vst.msk [vmem:[#allocation2 + $0xa0] sm:$0xff] %vm240_vm0, %v2559_v0  ;;  %262 = vst.msk [vmem:[#allocation2 + $0xa8] sm:$0xff] %vm240_vm0, %v2559_v0 }
  0x22   : > { %263 = vst.msk [vmem:[#allocation2 + $0xb0] sm:$0xff] %vm240_vm0, %v2559_v0  ;;  %264 = vst.msk [vmem:[#allocation2 + $0xb8] sm:$0xff] %vm240_vm0, %v2559_v0 }
  0x23 LB: >> { %v301_v1 = vlaneseq  ;;  %s271_s9 = sadd.s32 %s2557_s8, %s2148_s14  ;;  %s2149_s10 = sshll.u32 %s2557_s8, 3  ;;  %vm353_vm1 = vcmask 1046528   ;;  %vm479_vm2 = vcmask 1045504   ;;  %vm605_vm3 = vcmask 1044480   ;;  %s2557_s8 = sphi %s2706_s8, %s270_s8  }
  0x24   : >> { %s272_s15 = smul.u32 24, %s271_s9  ;;  %s299_s17 = scalar_lea.vmem %s3805_s1, %s2149_s10  ;;  %vm731_vm4 = vcmask 1043456   ;;  %vm857_vm5 = vcmask 1042432   ;;  %vm983_vm6 = vcmask 1041408  }
  0x25   : >> { %v302_v2 = vshrl.u32 %v301_v1, 7  ;;  %v300_v3 = vld [vmem:[%s299_s17] sm:$0x7f]  ;;  %s270_s8 = sadd.s32 1, %s2557_s8  }
  0x26   : >> { %s2719_s26 = scalar_lea.vmem %s2701_s27, %s272_s15  ;;  %p267_p13 = scmp.ge.s32.totalorder %s270_s8, 7  }
  0x27   : >> { %v303_v4 = vsub.s32 0, %v302_v2  ;;  %v429_v5 = vsub.s32 1, %v302_v2  ;;  %v555_v6 = vsub.s32 2, %v302_v2  ;;  %v681_v7 = vsub.s32 3, %v302_v2  ;;  %v2722_v11 = vld [vmem:[%s2719_s26] sm:$0xff]  ;;  %v275_v12 = vld [vmem:[%s2719_s26 + $0x8] sm:$0xff] }
  0x28   : >> { %v807_v8 = vsub.s32 4, %v302_v2  ;;  %v933_v9 = vsub.s32 5, %v302_v2  ;;  %v1059_v10 = vsub.s32 6, %v302_v2  ;;  %v354_v17 = vrot.slane %v2722_v11, 1  ;;  %v2754_v33 = vld [vmem:[%s2719_s26 + $0x10] sm:$0xff]  ;;  %v2784_v58 = vld [vmem:[%s2719_s26 + $0x18] sm:$0xff] }
  0x29   : >> { %v2725_v13 = vrot.slane %v300_v3, %v303_v4  ;;  %v2727_v14 = vrot.slane %v300_v3, %v429_v5  ;;  %v2729_v15 = vrot.slane %v300_v3, %v555_v6  ;;  %v2731_v16 = vrot.slane %v300_v3, %v681_v7  ;;  %s2174_s10 = smul.u32 (%p267_p13), 192, %s2537_s21  ;;  %s2201_s16 = sshll.u32 (%p267_p13), %s2537_s21, 4 }
  0x2a   : >> { %v355_v18 = vrot.slane %v275_v12, 1  ;;  %v480_v19 = vrot.slane %v2722_v11, 2  ;;  %v481_v20 = vrot.slane %v275_v12, 2  ;;  %v606_v22 = vrot.slane %v2722_v11, 3  ;;  %s2202_s17 = sshll.u32 (%p267_p13), %s2541_s22, 5  ;;  %s3753_s8 = scalar_lea.sflag (%p267_p13), [#allocation4], %s229_s12 }
  0x2b   : >> { %v305_v21 = vmul.f32 %v2725_v13, %v2722_v11  ;;  %v607_v23 = vrot.slane %v275_v12, 3  ;;  %v732_v24 = vrot.slane %v2722_v11, 4  ;;  %v733_v27 = vrot.slane %v275_v12, 4  ;;  %s3625_s14 = scalar_lea.vmem (%p267_p13), %s2701_s27, %s2174_s10  ;;  %s2047_s21 = sadd.s32 (%p267_p13), %s2202_s17, %s2201_s16 }
  0x2c   : >> { %v356_v25 = vsel %vm353_vm1, %v354_v17, %v355_v18  ;;  %v482_v26 = vsel %vm479_vm2, %v480_v19, %v481_v20  ;;  %v2745_v28 = vrot.slane %v300_v3, %v807_v8  ;;  %v858_v32 = vrot.slane %v2722_v11, 5  ;;  %s2203_s22 = sshll.u32 (%p267_p13), %s2047_s21, 7  ;;  %s2560_s27 = smov (%p267_p13), [#allocation3]  }
  0x2d   : >> { %v431_v29 = vmul.f32 %v2727_v14, %v356_v25  ;;  %v557_v30 = vmul.f32 %v2729_v15, %v482_v26  ;;  %v608_v31 = vsel %vm605_vm3, %v606_v22, %v607_v23  ;;  %v734_v35 = vsel %vm731_vm4, %v732_v24, %v733_v27  ;;  %s2461_s13 = sshll.u32 (%p267_p13), %s2560_s27, 4  ;;  %s2462_s13 = int_to_ptr.vmem [resolvable:$false] %s2461_s13 }
  0x2e   : >> { %v683_v34 = vmul.f32 %v2731_v16, %v608_v31  ;;  %v859_v36 = vrot.slane %v275_v12, 5  ;;  %v2760_v37 = vrot.slane %v300_v3, %v933_v9  ;;  %v809_v39 = vmul.f32 %v2745_v28, %v734_v35  ;;  %s2463_s16 = scalar_lea.vmem (%p267_p13), %s2462_s13, 4096 }
  0x2f   : >> { %v455_v38 = vadd.f32 %v431_v29, %v305_v21  ;;  %v984_v40 = vrot.slane %v2722_v11, 6  ;;  %v985_v41 = vrot.slane %v275_v12, 6  ;;  %v2767_v43 = vrot.slane %v300_v3, %v1059_v10  ;;  %v2150_v11 = vld [vmem:[%s3806_s2] ss:$0 sm:$0xff] (%p267_p13) }
  0x30   : >> { %v860_v42 = vsel %vm857_vm5, %v858_v32, %v859_v36  ;;  %v306_v44 = vmul.f32 %v2725_v13, %v275_v12  ;;  %v357_v45 = vrot.slane %v2754_v33, 1  ;;  %v483_v49 = vrot.slane %v2754_v33, 2  ;;  %v1109_v12 = vld [vmem:[#allocation2] sm:$0xff] }
  0x31   : >> { %v581_v46 = vadd.f32 %v557_v30, %v455_v38  ;;  %v935_v47 = vmul.f32 %v2760_v37, %v860_v42  ;;  %v986_v48 = vsel %vm983_vm6, %v984_v40, %v985_v41  ;;  %v609_v52 = vrot.slane %v2754_v33, 3 }
  0x32   : >> { %v1061_v50 = vmul.f32 %v2767_v43, %v986_v48  ;;  %v358_v51 = vsel %vm353_vm1, %v355_v18, %v357_v45  ;;  %v735_v53 = vrot.slane %v2754_v33, 4  ;;  %v484_v56 = vsel %vm479_vm2, %v481_v20, %v483_v49 }
  0x33   : >> { %v707_v54 = vadd.f32 %v683_v34, %v581_v46  ;;  %v432_v55 = vmul.f32 %v2727_v14, %v358_v51  ;;  %v861_v57 = vrot.slane %v2754_v33, 5  ;;  %v558_v59 = vmul.f32 %v2729_v15, %v484_v56  ;;  %v1110_v51 = vld [vmem:[#allocation2 + $0x8] sm:$0xff] }
  0x34   : >> { %v610_v60 = vsel %vm605_vm3, %v607_v23, %v609_v52  ;;  %v736_v61 = vsel %vm731_vm4, %v733_v27, %v735_v53  ;;  %v987_v62 = vrot.slane %v2754_v33, 6  ;;  %v307_v5 = vmul.f32 %v2725_v13, %v2754_v33 }
  0x35   : >> { %v833_v63 = vadd.f32 %v809_v39, %v707_v54  ;;  %v456_v0 = vadd.f32 %v432_v55, %v306_v44  ;;  %v684_v1 = vmul.f32 %v2731_v16, %v610_v60  ;;  %v810_v2 = vmul.f32 %v2745_v28, %v736_v61 }
  0x36   : >> { %v862_v3 = vsel %vm857_vm5, %v859_v36, %v861_v57  ;;  %v988_v4 = vsel %vm983_vm6, %v985_v41, %v987_v62  ;;  %v359_v6 = vrot.slane %v2784_v58, 1  ;;  %v485_v20 = vrot.slane %v2784_v58, 2  ;;  %v278_v41 = vld [vmem:[%s2719_s26 + $0x20] sm:$0xff] }
  0x37   : >> { %v959_v7 = vadd.f32 %v935_v47, %v833_v63  ;;  %v582_v8 = vadd.f32 %v558_v59, %v456_v0  ;;  %v936_v9 = vmul.f32 %v2760_v37, %v862_v3  ;;  %v1062_v10 = vmul.f32 %v2767_v43, %v988_v4  ;;  %v2826_v4 = vld [vmem:[%s2719_s26 + $0x28] sm:$0xff] }
  0x38   : >> { %v360_v18 = vsel %vm353_vm1, %v357_v45, %v359_v6  ;;  %v611_v21 = vrot.slane %v2784_v58, 3  ;;  %v737_v23 = vrot.slane %v2784_v58, 4  ;;  %v863_v29 = vrot.slane %v2784_v58, 5 }
  0x39   : >> { %v1085_v25 = vadd.f32 %v1061_v50, %v959_v7  ;;  %v708_v26 = vadd.f32 %v684_v1, %v582_v8  ;;  %v433_v27 = vmul.f32 %v2727_v14, %v360_v18  ;;  %v486_v30 = vsel %vm479_vm2, %v483_v49, %v485_v20 }
  0x3a   : >> { %v612_v31 = vsel %vm605_vm3, %v609_v52, %v611_v21  ;;  %v738_v33 = vsel %vm731_vm4, %v735_v53, %v737_v23  ;;  %v989_v34 = vrot.slane %v2784_v58, 6  ;;  %v559_v39 = vmul.f32 %v2729_v15, %v486_v30 }
  0x3b   : >> { %v1133_v35 = vadd.f32 %v1109_v12, %v1085_v25  ;;  %v834_v36 = vadd.f32 %v810_v2, %v708_v26  ;;  %v457_v38 = vadd.f32 %v433_v27, %v307_v5  ;;  %v685_v42 = vmul.f32 %v2731_v16, %v612_v31 }
  0x3c   : >> { %v811_v44 = vmul.f32 %v2745_v28, %v738_v33  ;;  %v864_v45 = vsel %vm857_vm5, %v861_v57, %v863_v29  ;;  %v990_v46 = vsel %vm983_vm6, %v987_v62, %v989_v34  ;;  %v308_v52 = vmul.f32 %v2725_v13, %v2784_v58 }
  0x3d   : >> { %1157 = vst.msk [vmem:[#allocation2] sm:$0xff] %vm240_vm0, %v1133_v35  ;;  %v960_v47 = vadd.f32 %v936_v9, %v834_v36  ;;  %v583_v48 = vadd.f32 %v559_v39, %v457_v38  ;;  %v937_v49 = vmul.f32 %v2760_v37, %v864_v45  ;;  %v1063_v50 = vmul.f32 %v2767_v43, %v990_v46 }
  0x3e   : >> { %v361_v53 = vrot.slane %v278_v41, 1  ;;  %v487_v54 = vrot.slane %v278_v41, 2  ;;  %v613_v55 = vrot.slane %v278_v41, 3  ;;  %v739_v59 = vrot.slane %v278_v41, 4 }
  0x3f   : >> { %v1086_v56 = vadd.f32 %v1062_v10, %v960_v47  ;;  %v709_v57 = vadd.f32 %v685_v42, %v583_v48  ;;  %v865_v60 = vrot.slane %v278_v41, 5  ;;  %v991_v0 = vrot.slane %v278_v41, 6 }
  0x40   : >> { %v362_v61 = vsel %vm353_vm1, %v359_v6, %v361_v53  ;;  %v488_v62 = vsel %vm479_vm2, %v485_v20, %v487_v54  ;;  %v614_v63 = vsel %vm605_vm3, %v611_v21, %v613_v55  ;;  %v740_v7 = vsel %vm731_vm4, %v737_v23, %v739_v59  ;;  %v1111_v20 = vld [vmem:[#allocation2 + $0x10] sm:$0xff] }
  0x41   : >> { %v1134_v1 = vadd.f32 %v1110_v51, %v1086_v56  ;;  %v835_v2 = vadd.f32 %v811_v44, %v709_v57  ;;  %v434_v3 = vmul.f32 %v2727_v14, %v362_v61  ;;  %v560_v58 = vmul.f32 %v2729_v15, %v488_v62  ;;  %v2848_v44 = vld [vmem:[%s2719_s26 + $0x30] sm:$0xff]  ;;  %v1112_v62 = vld [vmem:[#allocation2 + $0x18] sm:$0xff] }
  0x42   : >> { %v686_v5 = vmul.f32 %v2731_v16, %v614_v63  ;;  %v866_v8 = vsel %vm857_vm5, %v863_v29, %v865_v60  ;;  %v992_v6 = vsel %vm983_vm6, %v989_v34, %v991_v0  ;;  %v812_v12 = vmul.f32 %v2745_v28, %v740_v7 }
  0x43   : >> { %1158 = vst.msk [vmem:[#allocation2 + $0x8] sm:$0xff] %vm240_vm0, %v1134_v1  ;;  %v961_v9 = vadd.f32 %v937_v49, %v835_v2  ;;  %v458_v10 = vadd.f32 %v434_v3, %v308_v52  ;;  %v938_v18 = vmul.f32 %v2760_v37, %v866_v8  ;;  %v1064_v21 = vmul.f32 %v2767_v43, %v992_v6 }
  0x44   : >> { %v309_v25 = vmul.f32 %v2725_v13, %v278_v41  ;;  %v363_v23 = vrot.slane %v2826_v4, 1  ;;  %v489_v26 = vrot.slane %v2826_v4, 2  ;;  %v615_v30 = vrot.slane %v2826_v4, 3 }
  0x45   : >> { %v1087_v27 = vadd.f32 %v1063_v50, %v961_v9  ;;  %v584_v29 = vadd.f32 %v560_v58, %v458_v10  ;;  %v741_v31 = vrot.slane %v2826_v4, 4  ;;  %v867_v35 = vrot.slane %v2826_v4, 5  ;;  %v2875_v10 = vld [vmem:[%s2719_s26 + $0x38] sm:$0xff] }
  0x46   : >> { %v364_v33 = vsel %vm353_vm1, %v361_v53, %v363_v23  ;;  %v490_v34 = vsel %vm479_vm2, %v487_v54, %v489_v26  ;;  %v993_v36 = vrot.slane %v2826_v4, 6  ;;  %v616_v45 = vsel %vm605_vm3, %v613_v55, %v615_v30 }
  0x47   : >> { %v1135_v38 = vadd.f32 %v1111_v20, %v1087_v27  ;;  %v710_v39 = vadd.f32 %v686_v5, %v584_v29  ;;  %v435_v41 = vmul.f32 %v2727_v14, %v364_v33  ;;  %v561_v42 = vmul.f32 %v2729_v15, %v490_v34  ;;  %v1113_v34 = vld [vmem:[#allocation2 + $0x20] sm:$0xff] }
  0x48   : >> { %v742_v46 = vsel %vm731_vm4, %v739_v59, %v741_v31  ;;  %v868_v47 = vsel %vm857_vm5, %v865_v60, %v867_v35  ;;  %v994_v48 = vsel %vm983_vm6, %v991_v0, %v993_v36  ;;  %v687_v51 = vmul.f32 %v2731_v16, %v616_v45 }
  0x49   : >> { %1159 = vst.msk [vmem:[#allocation2 + $0x10] sm:$0xff] %vm240_vm0, %v1135_v38  ;;  %v836_v49 = vadd.f32 %v812_v12, %v710_v39  ;;  %v459_v50 = vadd.f32 %v435_v41, %v309_v25  ;;  %v813_v52 = vmul.f32 %v2745_v28, %v742_v46  ;;  %v939_v53 = vmul.f32 %v2760_v37, %v868_v47 }
  0x4a   : >> { %v1065_v54 = vmul.f32 %v2767_v43, %v994_v48  ;;  %v310_v55 = vmul.f32 %v2725_v13, %v2826_v4  ;;  %v365_v56 = vrot.slane %v2848_v44, 1  ;;  %v491_v60 = vrot.slane %v2848_v44, 2 }
  0x4b   : >> { %v962_v57 = vadd.f32 %v938_v18, %v836_v49  ;;  %v585_v59 = vadd.f32 %v561_v42, %v459_v50  ;;  %v617_v61 = vrot.slane %v2848_v44, 3  ;;  %v743_v0 = vrot.slane %v2848_v44, 4 }
  0x4c   : >> { %v366_v63 = vsel %vm353_vm1, %v363_v23, %v365_v56  ;;  %v869_v1 = vrot.slane %v2848_v44, 5  ;;  %v995_v2 = vrot.slane %v2848_v44, 6  ;;  %v492_v5 = vsel %vm479_vm2, %v489_v26, %v491_v60 }
  0x4d   : >> { %v1088_v3 = vadd.f32 %v1064_v21, %v962_v57  ;;  %v711_v58 = vadd.f32 %v687_v51, %v585_v59  ;;  %v436_v4 = vmul.f32 %v2727_v14, %v366_v63  ;;  %v562_v7 = vmul.f32 %v2729_v15, %v492_v5 }
  0x4e   : >> { %v618_v8 = vsel %vm605_vm3, %v615_v30, %v617_v61  ;;  %v744_v6 = vsel %vm731_vm4, %v741_v31, %v743_v0  ;;  %v870_v9 = vsel %vm857_vm5, %v867_v35, %v869_v1  ;;  %v996_v26 = vsel %vm983_vm6, %v993_v36, %v995_v2 }
  0x4f   : >> { %v1136_v12 = vadd.f32 %v1112_v62, %v1088_v3  ;;  %v837_v18 = vadd.f32 %v813_v52, %v711_v58  ;;  %v460_v20 = vadd.f32 %v436_v4, %v310_v55  ;;  %v688_v21 = vmul.f32 %v2731_v16, %v618_v8 }
  0x50   : >> { %v814_v25 = vmul.f32 %v2745_v28, %v744_v6  ;;  %v940_v23 = vmul.f32 %v2760_v37, %v870_v9  ;;  %v311_v27 = vmul.f32 %v2725_v13, %v2848_v44  ;;  %v1066_v31 = vmul.f32 %v2767_v43, %v996_v26 }
  0x51   : >> { %1160 = vst.msk [vmem:[#allocation2 + $0x18] sm:$0xff] %vm240_vm0, %v1136_v12  ;;  %v963_v29 = vadd.f32 %v939_v53, %v837_v18  ;;  %v586_v30 = vadd.f32 %v562_v7, %v460_v20  ;;  %v367_v33 = vrot.slane %v2875_v10, 1  ;;  %v493_v35 = vrot.slane %v2875_v10, 2 }
  0x52   : >> { %v619_v38 = vrot.slane %v2875_v10, 3  ;;  %v745_v39 = vrot.slane %v2875_v10, 4  ;;  %v871_v36 = vrot.slane %v2875_v10, 5  ;;  %v997_v45 = vrot.slane %v2875_v10, 6 }
  0x53   : >> { %v1089_v41 = vadd.f32 %v1065_v54, %v963_v29  ;;  %v712_v42 = vadd.f32 %v688_v21, %v586_v30  ;;  %v368_v44 = vsel %vm353_vm1, %v365_v56, %v367_v33  ;;  %v494_v47 = vsel %vm479_vm2, %v491_v60, %v493_v35  ;;  %v2899_v54 = vld [vmem:[%s2719_s26 + $0x40] sm:$0xff] }
  0x54   : >> { %v437_v46 = vmul.f32 %v2727_v14, %v368_v44  ;;  %v620_v48 = vsel %vm605_vm3, %v617_v61, %v619_v38  ;;  %v746_v49 = vsel %vm731_vm4, %v743_v0, %v745_v39  ;;  %v563_v52 = vmul.f32 %v2729_v15, %v494_v47  ;;  %v1114_v0 = vld [vmem:[#allocation2 + $0x28] sm:$0xff] }
  0x55   : >> { %v1137_v50 = vadd.f32 %v1113_v34, %v1089_v41  ;;  %v838_v51 = vadd.f32 %v814_v25, %v712_v42  ;;  %v689_v53 = vmul.f32 %v2731_v16, %v620_v48  ;;  %v815_v56 = vmul.f32 %v2745_v28, %v746_v49  ;;  %v1115_v42 = vld [vmem:[#allocation2 + $0x30] sm:$0xff] }
  0x56   : >> { %v461_v55 = vadd.f32 %v437_v46, %v311_v27  ;;  %v872_v57 = vsel %vm857_vm5, %v869_v1, %v871_v36  ;;  %v998_v59 = vsel %vm983_vm6, %v995_v2, %v997_v45  ;;  %v312_v63 = vmul.f32 %v2725_v13, %v2875_v10 }
  0x57   : >> { %1161 = vst.msk [vmem:[#allocation2 + $0x20] sm:$0xff] %vm240_vm0, %v1137_v50  ;;  %v964_v60 = vadd.f32 %v940_v23, %v838_v51  ;;  %v941_v61 = vmul.f32 %v2760_v37, %v872_v57  ;;  %v1067_v62 = vmul.f32 %v2767_v43, %v998_v59  ;;  %v369_v58 = vrot.slane %v2899_v54, 1  ;;  %v2922_v23 = vld [vmem:[%s2719_s26 + $0x48] sm:$0xff] }
  0x58   : >> { %v587_v3 = vadd.f32 %v563_v52, %v461_v55  ;;  %v495_v4 = vrot.slane %v2899_v54, 2  ;;  %v621_v1 = vrot.slane %v2899_v54, 3  ;;  %v747_v5 = vrot.slane %v2899_v54, 4 }
  0x59   : >> { %v1090_v2 = vadd.f32 %v1066_v31, %v964_v60  ;;  %v873_v7 = vrot.slane %v2899_v54, 5  ;;  %v999_v8 = vrot.slane %v2899_v54, 6  ;;  %v370_v9 = vsel %vm353_vm1, %v367_v33, %v369_v58 }
  0x5a   : >> { %v713_v6 = vadd.f32 %v689_v53, %v587_v3  ;;  %v496_v10 = vsel %vm479_vm2, %v493_v35, %v495_v4  ;;  %v622_v12 = vsel %vm605_vm3, %v619_v38, %v621_v1  ;;  %v438_v20 = vmul.f32 %v2727_v14, %v370_v9 }
  0x5b   : >> { %v1138_v18 = vadd.f32 %v1114_v0, %v1090_v2  ;;  %v564_v21 = vmul.f32 %v2729_v15, %v496_v10  ;;  %v690_v25 = vmul.f32 %v2731_v16, %v622_v12  ;;  %v748_v27 = vsel %vm731_vm4, %v745_v39, %v747_v5  ;;  %v1116_v10 = vld [vmem:[#allocation2 + $0x38] sm:$0xff] }
  0x5c   : >> { %v839_v26 = vadd.f32 %v815_v56, %v713_v6  ;;  %v874_v29 = vsel %vm857_vm5, %v871_v36, %v873_v7  ;;  %v1000_v30 = vsel %vm983_vm6, %v997_v45, %v999_v8  ;;  %v462_v31 = vadd.f32 %v438_v20, %v312_v63  ;;  %v2945_v56 = vld [vmem:[%s2719_s26 + $0x50] sm:$0xff] }
  0x5d   : >> { %1162 = vst.msk [vmem:[#allocation2 + $0x28] sm:$0xff] %vm240_vm0, %v1138_v18  ;;  %v816_v33 = vmul.f32 %v2745_v28, %v748_v27  ;;  %v942_v34 = vmul.f32 %v2760_v37, %v874_v29  ;;  %v1068_v35 = vmul.f32 %v2767_v43, %v1000_v30  ;;  %v313_v41 = vmul.f32 %v2725_v13, %v2899_v54 }
  0x5e   : >> { %v965_v38 = vadd.f32 %v941_v61, %v839_v26  ;;  %v371_v39 = vrot.slane %v2922_v23, 1  ;;  %v497_v36 = vrot.slane %v2922_v23, 2  ;;  %v588_v44 = vadd.f32 %v564_v21, %v462_v31 }
  0x5f   : >> { %v623_v45 = vrot.slane %v2922_v23, 3  ;;  %v749_v46 = vrot.slane %v2922_v23, 4  ;;  %v875_v47 = vrot.slane %v2922_v23, 5  ;;  %v1001_v51 = vrot.slane %v2922_v23, 6 }
  0x60   : >> { %v1091_v48 = vadd.f32 %v1067_v62, %v965_v38  ;;  %v372_v49 = vsel %vm353_vm1, %v369_v58, %v371_v39  ;;  %v498_v50 = vsel %vm479_vm2, %v495_v4, %v497_v36  ;;  %v714_v52 = vadd.f32 %v690_v25, %v588_v44 }
  0x61   : >> { %v439_v53 = vmul.f32 %v2727_v14, %v372_v49  ;;  %v565_v54 = vmul.f32 %v2729_v15, %v498_v50  ;;  %v624_v55 = vsel %vm605_vm3, %v621_v1, %v623_v45  ;;  %v750_v60 = vsel %vm731_vm4, %v747_v5, %v749_v46  ;;  %v1117_v49 = vld [vmem:[#allocation2 + $0x40] sm:$0xff] }
  0x62   : >> { %v1139_v57 = vadd.f32 %v1115_v42, %v1091_v48  ;;  %v691_v59 = vmul.f32 %v2731_v16, %v624_v55  ;;  %v876_v61 = vsel %vm857_vm5, %v873_v7, %v875_v47  ;;  %v840_v62 = vadd.f32 %v816_v33, %v714_v52  ;;  %v2971_v33 = vld [vmem:[%s2719_s26 + $0x58] sm:$0xff] }
  0x63   : >> { %v463_v63 = vadd.f32 %v439_v53, %v313_v41  ;;  %v817_v0 = vmul.f32 %v2745_v28, %v750_v60  ;;  %v943_v3 = vmul.f32 %v2760_v37, %v876_v61  ;;  %v1002_v58 = vsel %vm983_vm6, %v999_v8, %v1001_v51 }
  0x64   : >> { %1163 = vst.msk [vmem:[#allocation2 + $0x30] sm:$0xff] %vm240_vm0, %v1139_v57  ;;  %v314_v4 = vmul.f32 %v2725_v13, %v2922_v23  ;;  %v373_v1 = vrot.slane %v2945_v56, 1  ;;  %v499_v2 = vrot.slane %v2945_v56, 2  ;;  %v966_v5 = vadd.f32 %v942_v34, %v840_v62 }
  0x65   : >> { %v589_v6 = vadd.f32 %v565_v54, %v463_v63  ;;  %v1069_v7 = vmul.f32 %v2767_v43, %v1002_v58  ;;  %v625_v9 = vrot.slane %v2945_v56, 3  ;;  %v751_v8 = vrot.slane %v2945_v56, 4 }
  0x66   : >> { %v374_v12 = vsel %vm353_vm1, %v371_v39, %v373_v1  ;;  %v500_v18 = vsel %vm479_vm2, %v497_v36, %v499_v2  ;;  %v877_v20 = vrot.slane %v2945_v56, 5  ;;  %v1092_v21 = vadd.f32 %v1068_v35, %v966_v5 }
  0x67   : >> { %v715_v25 = vadd.f32 %v691_v59, %v589_v6  ;;  %v440_v23 = vmul.f32 %v2727_v14, %v374_v12  ;;  %v566_v26 = vmul.f32 %v2729_v15, %v500_v18  ;;  %v626_v27 = vsel %vm605_vm3, %v623_v45, %v625_v9  ;;  %v1118_v18 = vld [vmem:[#allocation2 + $0x48] sm:$0xff] }
  0x68   : >> { %v752_v29 = vsel %vm731_vm4, %v749_v46, %v751_v8  ;;  %v878_v30 = vsel %vm857_vm5, %v875_v47, %v877_v20  ;;  %v1003_v31 = vrot.slane %v2945_v56, 6  ;;  %v1140_v34 = vadd.f32 %v1116_v10, %v1092_v21 }
  0x69   : >> { %v841_v38 = vadd.f32 %v817_v0, %v715_v25  ;;  %v464_v41 = vadd.f32 %v440_v23, %v314_v4  ;;  %v692_v35 = vmul.f32 %v2731_v16, %v626_v27  ;;  %v818_v39 = vmul.f32 %v2745_v28, %v752_v29  ;;  %v2995_v4 = vld [vmem:[%s2719_s26 + $0x60] sm:$0xff] }
  0x6a   : >> { %v944_v36 = vmul.f32 %v2760_v37, %v878_v30  ;;  %v1004_v42 = vsel %vm983_vm6, %v1001_v51, %v1003_v31  ;;  %v315_v44 = vmul.f32 %v2725_v13, %v2945_v56  ;;  %1164 = vst.msk [vmem:[#allocation2 + $0x38] sm:$0xff] %vm240_vm0, %v1140_v34  ;;  %v375_v48 = vrot.slane %v2971_v33, 1 }
  0x6b   : >> { %v967_v45 = vadd.f32 %v943_v3, %v841_v38  ;;  %v590_v46 = vadd.f32 %v566_v26, %v464_v41  ;;  %v1070_v47 = vmul.f32 %v2767_v43, %v1004_v42  ;;  %v501_v50 = vrot.slane %v2971_v33, 2 }
  0x6c   : >> { %v627_v52 = vrot.slane %v2971_v33, 3  ;;  %v753_v53 = vrot.slane %v2971_v33, 4  ;;  %v879_v51 = vrot.slane %v2971_v33, 5  ;;  %v376_v56 = vsel %vm353_vm1, %v373_v1, %v375_v48 }
  0x6d   : >> { %v1093_v54 = vadd.f32 %v1069_v7, %v967_v45  ;;  %v716_v55 = vadd.f32 %v692_v35, %v590_v46  ;;  %v1005_v57 = vrot.slane %v2971_v33, 6  ;;  %v441_v59 = vmul.f32 %v2727_v14, %v376_v56 }
  0x6e   : >> { %v502_v60 = vsel %vm479_vm2, %v499_v2, %v501_v50  ;;  %v628_v61 = vsel %vm605_vm3, %v625_v9, %v627_v52  ;;  %v754_v62 = vsel %vm731_vm4, %v751_v8, %v753_v53  ;;  %v880_v6 = vsel %vm857_vm5, %v877_v20, %v879_v51 }
  0x6f   : >> { %v1141_v63 = vadd.f32 %v1117_v49, %v1093_v54  ;;  %v842_v0 = vadd.f32 %v818_v39, %v716_v55  ;;  %v567_v3 = vmul.f32 %v2729_v15, %v502_v60  ;;  %v693_v58 = vmul.f32 %v2731_v16, %v628_v61  ;;  %v1119_v55 = vld [vmem:[#allocation2 + $0x50] sm:$0xff] }
  0x70   : >> { %v465_v5 = vadd.f32 %v441_v59, %v315_v44  ;;  %v819_v1 = vmul.f32 %v2745_v28, %v754_v62  ;;  %v1006_v7 = vsel %vm983_vm6, %v1003_v31, %v1005_v57  ;;  %v945_v9 = vmul.f32 %v2760_v37, %v880_v6 }
  0x71   : >> { %1165 = vst.msk [vmem:[#allocation2 + $0x40] sm:$0xff] %vm240_vm0, %v1141_v63  ;;  %v968_v2 = vadd.f32 %v944_v36, %v842_v0  ;;  %v1071_v10 = vmul.f32 %v2767_v43, %v1006_v7  ;;  %v316_v12 = vmul.f32 %v2725_v13, %v2971_v33  ;;  %v377_v21 = vrot.slane %v2995_v4, 1  ;;  %v3018_v36 = vld [vmem:[%s2719_s26 + $0x68] sm:$0xff] }
  0x72   : >> { %v591_v8 = vadd.f32 %v567_v3, %v465_v5  ;;  %v503_v25 = vrot.slane %v2995_v4, 2  ;;  %v629_v20 = vrot.slane %v2995_v4, 3  ;;  %v755_v26 = vrot.slane %v2995_v4, 4 }
  0x73   : >> { %v1094_v23 = vadd.f32 %v1070_v47, %v968_v2  ;;  %v881_v27 = vrot.slane %v2995_v4, 5  ;;  %v1007_v29 = vrot.slane %v2995_v4, 6  ;;  %v378_v31 = vsel %vm353_vm1, %v375_v48, %v377_v21 }
  0x74   : >> { %v717_v30 = vadd.f32 %v693_v58, %v591_v8  ;;  %v504_v33 = vsel %vm479_vm2, %v501_v50, %v503_v25  ;;  %v630_v34 = vsel %vm605_vm3, %v627_v52, %v629_v20  ;;  %v442_v41 = vmul.f32 %v2727_v14, %v378_v31 }
  0x75   : >> { %v1142_v38 = vadd.f32 %v1118_v18, %v1094_v23  ;;  %v568_v35 = vmul.f32 %v2729_v15, %v504_v33  ;;  %v694_v39 = vmul.f32 %v2731_v16, %v630_v34  ;;  %v756_v44 = vsel %vm731_vm4, %v753_v53, %v755_v26  ;;  %v1120_v33 = vld [vmem:[#allocation2 + $0x58] sm:$0xff] }
  0x76   : >> { %v843_v42 = vadd.f32 %v819_v1, %v717_v30  ;;  %v882_v45 = vsel %vm857_vm5, %v879_v51, %v881_v27  ;;  %v1008_v46 = vsel %vm983_vm6, %v1005_v57, %v1007_v29  ;;  %v466_v47 = vadd.f32 %v442_v41, %v316_v12  ;;  %v3041_v1 = vld [vmem:[%s2719_s26 + $0x70] sm:$0xff] }
  0x77   : >> { %1166 = vst.msk [vmem:[#allocation2 + $0x48] sm:$0xff] %vm240_vm0, %v1142_v38  ;;  %v820_v48 = vmul.f32 %v2745_v28, %v756_v44  ;;  %v946_v49 = vmul.f32 %v2760_v37, %v882_v45  ;;  %v1072_v50 = vmul.f32 %v2767_v43, %v1008_v46  ;;  %v317_v54 = vmul.f32 %v2725_v13, %v2995_v4 }
  0x78   : >> { %v969_v52 = vadd.f32 %v945_v9, %v843_v42  ;;  %v379_v53 = vrot.slane %v3018_v36, 1  ;;  %v505_v51 = vrot.slane %v3018_v36, 2  ;;  %v592_v56 = vadd.f32 %v568_v35, %v466_v47 }
  0x79   : >> { %v631_v57 = vrot.slane %v3018_v36, 3  ;;  %v757_v59 = vrot.slane %v3018_v36, 4  ;;  %v883_v60 = vrot.slane %v3018_v36, 5  ;;  %v1009_v0 = vrot.slane %v3018_v36, 6 }
  0x7a   : >> { %v1095_v61 = vadd.f32 %v1071_v10, %v969_v52  ;;  %v380_v62 = vsel %vm353_vm1, %v377_v21, %v379_v53  ;;  %v506_v63 = vsel %vm479_vm2, %v503_v25, %v505_v51  ;;  %v718_v3 = vadd.f32 %v694_v39, %v592_v56 }
  0x7b   : >> { %v443_v58 = vmul.f32 %v2727_v14, %v380_v62  ;;  %v569_v4 = vmul.f32 %v2729_v15, %v506_v63  ;;  %v632_v5 = vsel %vm605_vm3, %v629_v20, %v631_v57  ;;  %v758_v2 = vsel %vm731_vm4, %v755_v26, %v757_v59  ;;  %v1121_v62 = vld [vmem:[#allocation2 + $0x60] sm:$0xff] }
  0x7c   : >> { %v1143_v6 = vadd.f32 %v1119_v55, %v1095_v61  ;;  %v695_v7 = vmul.f32 %v2731_v16, %v632_v5  ;;  %v884_v9 = vsel %vm857_vm5, %v881_v27, %v883_v60  ;;  %v844_v10 = vadd.f32 %v820_v48, %v718_v3  ;;  %v3067_v48 = vld [vmem:[%s2719_s26 + $0x78] sm:$0xff] }
  0x7d   : >> { %v467_v12 = vadd.f32 %v443_v58, %v317_v54  ;;  %v821_v18 = vmul.f32 %v2745_v28, %v758_v2  ;;  %v947_v8 = vmul.f32 %v2760_v37, %v884_v9  ;;  %v1010_v21 = vsel %vm983_vm6, %v1007_v29, %v1009_v0 }
  0x7e   : >> { %1167 = vst.msk [vmem:[#allocation2 + $0x50] sm:$0xff] %vm240_vm0, %v1143_v6  ;;  %v318_v25 = vmul.f32 %v2725_v13, %v3018_v36  ;;  %v381_v20 = vrot.slane %v3041_v1, 1  ;;  %v507_v23 = vrot.slane %v3041_v1, 2  ;;  %v970_v26 = vadd.f32 %v946_v49, %v844_v10 }
  0x7f   : >> { %v593_v30 = vadd.f32 %v569_v4, %v467_v12  ;;  %v1073_v27 = vmul.f32 %v2767_v43, %v1010_v21  ;;  %v633_v31 = vrot.slane %v3041_v1, 3  ;;  %v759_v29 = vrot.slane %v3041_v1, 4 }
  0x80   : >> { %v382_v34 = vsel %vm353_vm1, %v379_v53, %v381_v20  ;;  %v508_v38 = vsel %vm479_vm2, %v505_v51, %v507_v23  ;;  %v885_v41 = vrot.slane %v3041_v1, 5  ;;  %v1096_v35 = vadd.f32 %v1072_v50, %v970_v26 }
  0x81   : >> { %v719_v39 = vadd.f32 %v695_v7, %v593_v30  ;;  %v444_v36 = vmul.f32 %v2727_v14, %v382_v34  ;;  %v570_v42 = vmul.f32 %v2729_v15, %v508_v38  ;;  %v634_v44 = vsel %vm605_vm3, %v631_v57, %v633_v31  ;;  %v1122_v38 = vld [vmem:[#allocation2 + $0x68] sm:$0xff] }
  0x82   : >> { %v760_v45 = vsel %vm731_vm4, %v757_v59, %v759_v29  ;;  %v886_v46 = vsel %vm857_vm5, %v883_v60, %v885_v41  ;;  %v1011_v47 = vrot.slane %v3041_v1, 6  ;;  %v1144_v49 = vadd.f32 %v1120_v33, %v1096_v35 }
  0x83   : >> { %v845_v52 = vadd.f32 %v821_v18, %v719_v39  ;;  %v468_v54 = vadd.f32 %v444_v36, %v318_v25  ;;  %v696_v50 = vmul.f32 %v2731_v16, %v634_v44  ;;  %v822_v53 = vmul.f32 %v2745_v28, %v760_v45  ;;  %v3091_v25 = vld [vmem:[%s2719_s26 + $0x80] sm:$0xff] }
  0x84   : >> { %v948_v51 = vmul.f32 %v2760_v37, %v886_v46  ;;  %v1012_v55 = vsel %vm983_vm6, %v1009_v0, %v1011_v47  ;;  %v319_v56 = vmul.f32 %v2725_v13, %v3041_v1  ;;  %1168 = vst.msk [vmem:[#allocation2 + $0x58] sm:$0xff] %vm240_vm0, %v1144_v49  ;;  %v383_v61 = vrot.slane %v3067_v48, 1 }
  0x85   : >> { %v971_v57 = vadd.f32 %v947_v8, %v845_v52  ;;  %v594_v59 = vadd.f32 %v570_v42, %v468_v54  ;;  %v1074_v60 = vmul.f32 %v2767_v43, %v1012_v55  ;;  %v509_v63 = vrot.slane %v3067_v48, 2 }
  0x86   : >> { %v635_v3 = vrot.slane %v3067_v48, 3  ;;  %v761_v58 = vrot.slane %v3067_v48, 4  ;;  %v887_v0 = vrot.slane %v3067_v48, 5  ;;  %v384_v1 = vsel %vm353_vm1, %v381_v20, %v383_v61 }
  0x87   : >> { %v1097_v4 = vadd.f32 %v1073_v27, %v971_v57  ;;  %v720_v5 = vadd.f32 %v696_v50, %v594_v59  ;;  %v1013_v6 = vrot.slane %v3067_v48, 6  ;;  %v445_v7 = vmul.f32 %v2727_v14, %v384_v1 }
  0x88   : >> { %v510_v2 = vsel %vm479_vm2, %v507_v23, %v509_v63  ;;  %v636_v9 = vsel %vm605_vm3, %v633_v31, %v635_v3  ;;  %v762_v10 = vsel %vm731_vm4, %v759_v29, %v761_v58  ;;  %v888_v30 = vsel %vm857_vm5, %v885_v41, %v887_v0 }
  0x89   : >> { %v1145_v12 = vadd.f32 %v1121_v62, %v1097_v4  ;;  %v846_v18 = vadd.f32 %v822_v53, %v720_v5  ;;  %v571_v8 = vmul.f32 %v2729_v15, %v510_v2  ;;  %v697_v21 = vmul.f32 %v2731_v16, %v636_v9  ;;  %v1123_v5 = vld [vmem:[#allocation2 + $0x70] sm:$0xff] }
  0x8a   : >> { %v469_v26 = vadd.f32 %v445_v7, %v319_v56  ;;  %v823_v20 = vmul.f32 %v2745_v28, %v762_v10  ;;  %v1014_v27 = vsel %vm983_vm6, %v1011_v47, %v1013_v6  ;;  %v949_v31 = vmul.f32 %v2760_v37, %v888_v30 }
  0x8b   : >> { %1169 = vst.msk [vmem:[#allocation2 + $0x60] sm:$0xff] %vm240_vm0, %v1145_v12  ;;  %v972_v23 = vadd.f32 %v948_v51, %v846_v18  ;;  %v1075_v33 = vmul.f32 %v2767_v43, %v1014_v27  ;;  %v320_v34 = vmul.f32 %v2725_v13, %v3067_v48  ;;  %v385_v35 = vrot.slane %v3091_v25, 1  ;;  %v3114_v51 = vld [vmem:[%s2719_s26 + $0x88] sm:$0xff] }
  0x8c   : >> { %v595_v29 = vadd.f32 %v571_v8, %v469_v26  ;;  %v511_v39 = vrot.slane %v3091_v25, 2  ;;  %v637_v41 = vrot.slane %v3091_v25, 3  ;;  %v763_v42 = vrot.slane %v3091_v25, 4 }
  0x8d   : >> { %v1098_v36 = vadd.f32 %v1074_v60, %v972_v23  ;;  %v889_v44 = vrot.slane %v3091_v25, 5  ;;  %v1015_v45 = vrot.slane %v3091_v25, 6  ;;  %v386_v47 = vsel %vm353_vm1, %v383_v61, %v385_v35 }
  0x8e   : >> { %v721_v46 = vadd.f32 %v697_v21, %v595_v29  ;;  %v512_v48 = vsel %vm479_vm2, %v509_v63, %v511_v39  ;;  %v638_v49 = vsel %vm605_vm3, %v635_v3, %v637_v41  ;;  %v446_v54 = vmul.f32 %v2727_v14, %v386_v47 }
  0x8f   : >> { %v1146_v52 = vadd.f32 %v1122_v38, %v1098_v36  ;;  %v572_v50 = vmul.f32 %v2729_v15, %v512_v48  ;;  %v698_v53 = vmul.f32 %v2731_v16, %v638_v49  ;;  %v764_v56 = vsel %vm731_vm4, %v761_v58, %v763_v42  ;;  %v1124_v48 = vld [vmem:[#allocation2 + $0x78] sm:$0xff] }
  0x90   : >> { %v847_v55 = vadd.f32 %v823_v20, %v721_v46  ;;  %v890_v57 = vsel %vm857_vm5, %v887_v0, %v889_v44  ;;  %v1016_v59 = vsel %vm983_vm6, %v1013_v6, %v1015_v45  ;;  %v470_v60 = vadd.f32 %v446_v54, %v320_v34  ;;  %v3137_v20 = vld [vmem:[%s2719_s26 + $0x90] sm:$0xff] }
  0x91   : >> { %1170 = vst.msk [vmem:[#allocation2 + $0x68] sm:$0xff] %vm240_vm0, %v1146_v52  ;;  %v824_v61 = vmul.f32 %v2745_v28, %v764_v56  ;;  %v950_v62 = vmul.f32 %v2760_v37, %v890_v57  ;;  %v1076_v63 = vmul.f32 %v2767_v43, %v1016_v59  ;;  %v321_v4 = vmul.f32 %v2725_v13, %v3091_v25 }
  0x92   : >> { %v973_v3 = vadd.f32 %v949_v31, %v847_v55  ;;  %v387_v58 = vrot.slane %v3114_v51, 1  ;;  %v513_v0 = vrot.slane %v3114_v51, 2  ;;  %v596_v1 = vadd.f32 %v572_v50, %v470_v60 }
  0x93   : >> { %v639_v6 = vrot.slane %v3114_v51, 3  ;;  %v765_v7 = vrot.slane %v3114_v51, 4  ;;  %v891_v2 = vrot.slane %v3114_v51, 5  ;;  %v1017_v18 = vrot.slane %v3114_v51, 6 }
  0x94   : >> { %v1099_v9 = vadd.f32 %v1075_v33, %v973_v3  ;;  %v388_v10 = vsel %vm353_vm1, %v385_v35, %v387_v58  ;;  %v514_v12 = vsel %vm479_vm2, %v511_v39, %v513_v0  ;;  %v722_v8 = vadd.f32 %v698_v53, %v596_v1 }
  0x95   : >> { %v447_v21 = vmul.f32 %v2727_v14, %v388_v10  ;;  %v573_v25 = vmul.f32 %v2729_v15, %v514_v12  ;;  %v640_v26 = vsel %vm605_vm3, %v637_v41, %v639_v6  ;;  %v766_v23 = vsel %vm731_vm4, %v763_v42, %v765_v7  ;;  %v1125_v10 = vld [vmem:[#allocation2 + $0x80] sm:$0xff] }
  0x96   : >> { %v1147_v30 = vadd.f32 %v1123_v5, %v1099_v9  ;;  %v699_v27 = vmul.f32 %v2731_v16, %v640_v26  ;;  %v892_v31 = vsel %vm857_vm5, %v889_v44, %v891_v2  ;;  %v848_v33 = vadd.f32 %v824_v61, %v722_v8  ;;  %v3163_v61 = vld [vmem:[%s2719_s26 + $0x98] sm:$0xff] }
  0x97   : >> { %v471_v34 = vadd.f32 %v447_v21, %v321_v4  ;;  %v825_v38 = vmul.f32 %v2745_v28, %v766_v23  ;;  %v951_v29 = vmul.f32 %v2760_v37, %v892_v31  ;;  %v1018_v35 = vsel %vm983_vm6, %v1015_v45, %v1017_v18 }
  0x98   : >> { %1171 = vst.msk [vmem:[#allocation2 + $0x70] sm:$0xff] %vm240_vm0, %v1147_v30  ;;  %v322_v39 = vmul.f32 %v2725_v13, %v3114_v51  ;;  %v389_v41 = vrot.slane %v3137_v20, 1  ;;  %v515_v36 = vrot.slane %v3137_v20, 2  ;;  %v974_v42 = vadd.f32 %v950_v62, %v848_v33 }
  0x99   : >> { %v597_v46 = vadd.f32 %v573_v25, %v471_v34  ;;  %v1077_v44 = vmul.f32 %v2767_v43, %v1018_v35  ;;  %v641_v47 = vrot.slane %v3137_v20, 3  ;;  %v767_v45 = vrot.slane %v3137_v20, 4 }
  0x9a   : >> { %v390_v49 = vsel %vm353_vm1, %v387_v58, %v389_v41  ;;  %v516_v52 = vsel %vm479_vm2, %v513_v0, %v515_v36  ;;  %v893_v54 = vrot.slane %v3137_v20, 5  ;;  %v1100_v50 = vadd.f32 %v1076_v63, %v974_v42 }
  0x9b   : >> { %v723_v53 = vadd.f32 %v699_v27, %v597_v46  ;;  %v448_v51 = vmul.f32 %v2727_v14, %v390_v49  ;;  %v574_v55 = vmul.f32 %v2729_v15, %v516_v52  ;;  %v642_v56 = vsel %vm605_vm3, %v639_v6, %v641_v47  ;;  %v1126_v52 = vld [vmem:[#allocation2 + $0x88] sm:$0xff] }
  0x9c   : >> { %v768_v57 = vsel %vm731_vm4, %v765_v7, %v767_v45  ;;  %v894_v59 = vsel %vm857_vm5, %v891_v2, %v893_v54  ;;  %v1019_v60 = vrot.slane %v3137_v20, 6  ;;  %v1148_v62 = vadd.f32 %v1124_v48, %v1100_v50 }
  0x9d   : >> { %v849_v3 = vadd.f32 %v825_v38, %v723_v53  ;;  %v472_v4 = vadd.f32 %v448_v51, %v322_v39  ;;  %v700_v63 = vmul.f32 %v2731_v16, %v642_v56  ;;  %v826_v58 = vmul.f32 %v2745_v28, %v768_v57  ;;  %v3187_v39 = vld [vmem:[%s2719_s26 + $0xa0] sm:$0xff] }
  0x9e   : >> { %v952_v0 = vmul.f32 %v2760_v37, %v894_v59  ;;  %v1020_v5 = vsel %vm983_vm6, %v1017_v18, %v1019_v60  ;;  %v323_v1 = vmul.f32 %v2725_v13, %v3137_v20  ;;  %1172 = vst.msk [vmem:[#allocation2 + $0x78] sm:$0xff] %vm240_vm0, %v1148_v62  ;;  %v391_v9 = vrot.slane %v3163_v61, 1 }
  0x9f   : >> { %v975_v6 = vadd.f32 %v951_v29, %v849_v3  ;;  %v598_v7 = vadd.f32 %v574_v55, %v472_v4  ;;  %v1078_v2 = vmul.f32 %v2767_v43, %v1020_v5  ;;  %v517_v12 = vrot.slane %v3163_v61, 2 }
  0xa0   : >> { %v643_v8 = vrot.slane %v3163_v61, 3  ;;  %v769_v21 = vrot.slane %v3163_v61, 4  ;;  %v895_v18 = vrot.slane %v3163_v61, 5  ;;  %v392_v20 = vsel %vm353_vm1, %v389_v41, %v391_v9 }
  0xa1   : >> { %v1101_v25 = vadd.f32 %v1077_v44, %v975_v6  ;;  %v724_v26 = vadd.f32 %v700_v63, %v598_v7  ;;  %v1021_v30 = vrot.slane %v3163_v61, 6  ;;  %v449_v27 = vmul.f32 %v2727_v14, %v392_v20 }
  0xa2   : >> { %v518_v23 = vsel %vm479_vm2, %v515_v36, %v517_v12  ;;  %v644_v31 = vsel %vm605_vm3, %v641_v47, %v643_v8  ;;  %v770_v33 = vsel %vm731_vm4, %v767_v45, %v769_v21  ;;  %v896_v46 = vsel %vm857_vm5, %v893_v54, %v895_v18 }
  0xa3   : >> { %v1149_v34 = vadd.f32 %v1125_v10, %v1101_v25  ;;  %v850_v38 = vadd.f32 %v826_v58, %v724_v26  ;;  %v575_v29 = vmul.f32 %v2729_v15, %v518_v23  ;;  %v701_v35 = vmul.f32 %v2731_v16, %v644_v31  ;;  %v1127_v26 = vld [vmem:[#allocation2 + $0x90] sm:$0xff] }
  0xa4   : >> { %v473_v42 = vadd.f32 %v449_v27, %v323_v1  ;;  %v827_v41 = vmul.f32 %v2745_v28, %v770_v33  ;;  %v1022_v44 = vsel %vm983_vm6, %v1019_v60, %v1021_v30  ;;  %v953_v47 = vmul.f32 %v2760_v37, %v896_v46 }
  0xa5   : >> { %1173 = vst.msk [vmem:[#allocation2 + $0x80] sm:$0xff] %vm240_vm0, %v1149_v34  ;;  %v976_v36 = vadd.f32 %v952_v0, %v850_v38  ;;  %v1079_v48 = vmul.f32 %v2767_v43, %v1022_v44  ;;  %v324_v49 = vmul.f32 %v2725_v13, %v3163_v61  ;;  %v393_v50 = vrot.slane %v3187_v39, 1  ;;  %v3210_v0 = vld [vmem:[%s2719_s26 + $0xa8] sm:$0xff] }
  0xa6   : >> { %v599_v45 = vadd.f32 %v575_v29, %v473_v42  ;;  %v519_v53 = vrot.slane %v3187_v39, 2  ;;  %v645_v54 = vrot.slane %v3187_v39, 3  ;;  %v771_v55 = vrot.slane %v3187_v39, 4 }
  0xa7   : >> { %v1102_v51 = vadd.f32 %v1078_v2, %v976_v36  ;;  %v897_v56 = vrot.slane %v3187_v39, 5  ;;  %v1023_v57 = vrot.slane %v3187_v39, 6  ;;  %v394_v60 = vsel %vm353_vm1, %v391_v9, %v393_v50 }
  0xa8   : >> { %v725_v59 = vadd.f32 %v701_v35, %v599_v45  ;;  %v520_v61 = vsel %vm479_vm2, %v517_v12, %v519_v53  ;;  %v646_v62 = vsel %vm605_vm3, %v643_v8, %v645_v54  ;;  %v450_v4 = vmul.f32 %v2727_v14, %v394_v60 }
  0xa9   : >> { %v1150_v3 = vadd.f32 %v1126_v52, %v1102_v51  ;;  %v576_v63 = vmul.f32 %v2729_v15, %v520_v61  ;;  %v702_v58 = vmul.f32 %v2731_v16, %v646_v62  ;;  %v772_v1 = vsel %vm731_vm4, %v769_v21, %v771_v55  ;;  %v1128_v61 = vld [vmem:[#allocation2 + $0x98] sm:$0xff] }
  0xaa   : >> { %v851_v5 = vadd.f32 %v827_v41, %v725_v59  ;;  %v898_v6 = vsel %vm857_vm5, %v895_v18, %v897_v56  ;;  %v1024_v7 = vsel %vm983_vm6, %v1021_v30, %v1023_v57  ;;  %v474_v2 = vadd.f32 %v450_v4, %v324_v49  ;;  %v3233_v41 = vld [vmem:[%s2719_s26 + $0xb0] sm:$0xff] }
  0xab   : >> { %1174 = vst.msk [vmem:[#allocation2 + $0x88] sm:$0xff] %vm240_vm0, %v1150_v3  ;;  %v828_v9 = vmul.f32 %v2745_v28, %v772_v1  ;;  %v954_v10 = vmul.f32 %v2760_v37, %v898_v6  ;;  %v1080_v12 = vmul.f32 %v2767_v43, %v1024_v7  ;;  %v325_v25 = vmul.f32 %v2725_v13, %v3187_v39 }
  0xac   : >> { %v977_v8 = vadd.f32 %v953_v47, %v851_v5  ;;  %v395_v21 = vrot.slane %v3210_v0, 1  ;;  %v521_v18 = vrot.slane %v3210_v0, 2  ;;  %v600_v20 = vadd.f32 %v576_v63, %v474_v2 }
  0xad   : >> { %v647_v30 = vrot.slane %v3210_v0, 3  ;;  %v773_v27 = vrot.slane %v3210_v0, 4  ;;  %v899_v23 = vrot.slane %v3210_v0, 5  ;;  %v1025_v38 = vrot.slane %v3210_v0, 6 }
  0xae   : >> { %v1103_v31 = vadd.f32 %v1079_v48, %v977_v8  ;;  %v396_v33 = vsel %vm353_vm1, %v393_v50, %v395_v21  ;;  %v522_v34 = vsel %vm479_vm2, %v519_v53, %v521_v18  ;;  %v726_v29 = vadd.f32 %v702_v58, %v600_v20 }
  0xaf   : >> { %v451_v35 = vmul.f32 %v2727_v14, %v396_v33  ;;  %v577_v39 = vmul.f32 %v2729_v15, %v522_v34  ;;  %v648_v42 = vsel %vm605_vm3, %v645_v54, %v647_v30  ;;  %v774_v36 = vsel %vm731_vm4, %v771_v55, %v773_v27 }
  0xb0   : >> { %v1151_v46 = vadd.f32 %v1127_v26, %v1103_v31  ;;  %v703_v44 = vmul.f32 %v2731_v16, %v648_v42  ;;  %v900_v47 = vsel %vm857_vm5, %v897_v56, %v899_v23  ;;  %v852_v48 = vadd.f32 %v828_v9, %v726_v29  ;;  %v297_v9 = vld [vmem:[%s2719_s26 + $0xb8] sm:$0xff]  ;;  %v1129_v31 = vld [vmem:[#allocation2 + $0xa0] sm:$0xff]  ;;  %s2050_s26 = sshll.u32 (%p267_p13), %s2704_s30, 4  ;;  %s3745_s26 = int_to_ptr.vmem [resolvable:$true] %s2050_s26 }
  0xb1   : >> { %v475_v49 = vadd.f32 %v451_v35, %v325_v25  ;;  %v829_v52 = vmul.f32 %v2745_v28, %v774_v36  ;;  %v955_v45 = vmul.f32 %v2760_v37, %v900_v47  ;;  %v1026_v50 = vsel %vm983_vm6, %v1023_v57, %v1025_v38  ;;  %s2457_s15 = scalar_lea.vmem (%p267_p13), %s3745_s26, 2048  ;;  %p2464_p4 = scmp.lt.s32.totalorder (%p267_p13), %s3745_s26, %s2462_s13 }
  0xb2   : >> { %1175 = vst.msk [vmem:[#allocation2 + $0x90] sm:$0xff] %vm240_vm0, %v1151_v46  ;;  %v326_v53 = vmul.f32 %v2725_v13, %v3210_v0  ;;  %v397_v54 = vrot.slane %v3233_v41, 1  ;;  %v523_v51 = vrot.slane %v3233_v41, 2  ;;  %v978_v55 = vadd.f32 %v954_v10, %v852_v48  ;;  %p2458_p0 = scmp.ne.s32.totalorder (%p267_p13), %s3745_s26, %s2457_s15  ;;  %p2465_p5 = scmp.lt.s32.totalorder (%p267_p13), %s2463_s16, %s2457_s15 }
  0xb3   : >> { %v601_v59 = vadd.f32 %v577_v39, %v475_v49  ;;  %v1081_v56 = vmul.f32 %v2767_v43, %v1026_v50  ;;  %v649_v60 = vrot.slane %v3233_v41, 3  ;;  %v775_v57 = vrot.slane %v3233_v41, 4 }
  0xb4   : >> { %v398_v62 = vsel %vm353_vm1, %v395_v21, %v397_v54  ;;  %v524_v3 = vsel %vm479_vm2, %v521_v18, %v523_v51  ;;  %v901_v4 = vrot.slane %v3233_v41, 5  ;;  %v1104_v63 = vadd.f32 %v1080_v12, %v978_v55  ;;  %p2459_p1 = pnand (%p267_p13), %p2458_p0, %p2644_p3  ;;  %p2466_p6 = por (%p267_p13), %p2465_p5, %p2464_p4 }
  0xb5   : >> { %v727_v58 = vadd.f32 %v703_v44, %v601_v59  ;;  %v452_v0 = vmul.f32 %v2727_v14, %v398_v62  ;;  %v578_v5 = vmul.f32 %v2729_v15, %v524_v3  ;;  %v650_v1 = vsel %vm605_vm3, %v647_v30, %v649_v60 }
  0xb6   : >> { %v776_v6 = vsel %vm731_vm4, %v773_v27, %v775_v57  ;;  %v902_v7 = vsel %vm857_vm5, %v899_v23, %v901_v4  ;;  %v1027_v2 = vrot.slane %v3233_v41, 6  ;;  %v1152_v10 = vadd.f32 %v1128_v61, %v1104_v63  ;;  %p2460_p2 = pneg (%p267_p13), %p2459_p1 }
  0xb7   : >> { %v853_v8 = vadd.f32 %v829_v52, %v727_v58  ;;  %v476_v25 = vadd.f32 %v452_v0, %v326_v53  ;;  %v704_v21 = vmul.f32 %v2731_v16, %v650_v1  ;;  %v830_v12 = vmul.f32 %v2745_v28, %v776_v6 }
  0xb8   : >> { %v956_v18 = vmul.f32 %v2760_v37, %v902_v7  ;;  %v1028_v26 = vsel %vm983_vm6, %v1025_v38, %v1027_v2  ;;  %1176 = vst.msk [vmem:[#allocation2 + $0x98] sm:$0xff] %vm240_vm0, %v1152_v10  ;;  %v327_v27 = vmul.f32 %v2725_v13, %v3233_v41  ;;  %v399_v23 = vrot.slane %v297_v9, 1  ;;  %p2467_p7 = pnand (%p267_p13), %p2466_p6, %p2460_p2 }
  0xb9   : >> { %v979_v20 = vadd.f32 %v955_v45, %v853_v8  ;;  %v602_v30 = vadd.f32 %v578_v5, %v476_v25  ;;  %v1082_v33 = vmul.f32 %v2767_v43, %v1028_v26  ;;  %v525_v34 = vrot.slane %v297_v9, 2 }
  0xba   : >> { %v651_v29 = vrot.slane %v297_v9, 3  ;;  %v777_v35 = vrot.slane %v297_v9, 4  ;;  %v400_v46 = vsel %vm353_vm1, %v397_v54, %v399_v23  ;;  %v903_v44 = vrot.slane %v297_v9, 5 }
  0xbb   : >> { %v1105_v39 = vadd.f32 %v1081_v56, %v979_v20  ;;  %v728_v42 = vadd.f32 %v704_v21, %v602_v30  ;;  %v453_v38 = vmul.f32 %v2727_v14, %v400_v46  ;;  %v526_v36 = vsel %vm479_vm2, %v523_v51, %v525_v34  ;;  %v1130_v56 = vld [vmem:[#allocation2 + $0xa8] sm:$0xff] }
  0xbc   : >> { %v652_v47 = vsel %vm605_vm3, %v649_v60, %v651_v29  ;;  %v778_v41 = vsel %vm731_vm4, %v775_v57, %v777_v35  ;;  %v579_v52 = vmul.f32 %v2729_v15, %v526_v36  ;;  %v1029_v45 = vrot.slane %v297_v9, 6  ;;  %v1188_v30 = vld [vmem:[#allocation2 + $0x8] sm:$0xff] (%p267_p13) }
  0xbd   : >> { %v1153_v48 = vadd.f32 %v1129_v31, %v1105_v39  ;;  %v854_v49 = vadd.f32 %v830_v12, %v728_v42  ;;  %v477_v50 = vadd.f32 %v453_v38, %v327_v27  ;;  %v705_v53 = vmul.f32 %v2731_v16, %v652_v47  ;;  %v1190_v27 = vld [vmem:[#allocation2 + $0x20] sm:$0xff] (%p267_p13)  ;;  %v1193_v39 = vld [vmem:[#allocation2 + $0x48] sm:$0xff] (%p267_p13)  ;;  %v1194_v42 = vld [vmem:[#allocation2 + $0x50] sm:$0xff] (%p267_p13) }
  0xbe   : >> { %v831_v55 = vmul.f32 %v2745_v28, %v778_v41  ;;  %v904_v59 = vsel %vm857_vm5, %v901_v4, %v903_v44  ;;  %v328_v51 = vmul.f32 %v2725_v13, %v297_v9  ;;  %v426_v61 = vsel %vm353_vm1, %v399_v23, %v354_v17  ;;  %v1131_v9 = vld [vmem:[#allocation2 + $0xb0] sm:$0xff] }
  0xbf   : >> { %1177 = vst.msk [vmem:[#allocation2 + $0xa0] sm:$0xff] %vm240_vm0, %v1153_v48  ;;  %v980_v54 = vadd.f32 %v956_v18, %v854_v49  ;;  %v603_v60 = vadd.f32 %v579_v52, %v477_v50  ;;  %v552_v62 = vsel %vm479_vm2, %v525_v34, %v480_v19  ;;  %v678_v3 = vsel %vm605_vm3, %v651_v29, %v606_v22  ;;  %v1132_v18 = vld [vmem:[#allocation2 + $0xb8] sm:$0xff]  ;;  %v1195_v48 = vld [vmem:[#allocation2 + $0x60] sm:$0xff] (%p267_p13)  ;;  %v1196_v49 = vld [vmem:[#allocation2 + $0x68] sm:$0xff] (%p267_p13) }
  0xc0   : >> { %v1030_v63 = vsel %vm983_vm6, %v1027_v2, %v1029_v45  ;;  %v454_v4 = vmul.f32 %v2727_v14, %v426_v61  ;;  %v580_v13 = vmul.f32 %v2729_v15, %v552_v62  ;;  %v957_v0 = vmul.f32 %v2760_v37, %v904_v59  ;;  %v1192_v34 = vld [vmem:[#allocation2 + $0x38] sm:$0xff] (%p267_p13) }
  0xc1   : >> { %v1106_v57 = vadd.f32 %v1082_v33, %v980_v54  ;;  %v729_v58 = vadd.f32 %v705_v53, %v603_v60  ;;  %v804_v17 = vsel %vm731_vm4, %v777_v35, %v732_v24  ;;  %v706_v1 = vmul.f32 %v2731_v16, %v678_v3  ;;  %v1191_v33 = vld [vmem:[#allocation2 + $0x30] sm:$0xff] (%p267_p13)  ;;  %v1197_v59 = vld [vmem:[#allocation2 + $0x78] sm:$0xff] (%p267_p13) }
  0xc2   : >> { %v478_v19 = vadd.f32 %v454_v4, %v328_v51  ;;  %v1083_v22 = vmul.f32 %v2767_v43, %v1030_v63  ;;  %v930_v14 = vsel %vm857_vm5, %v903_v44, %v858_v32  ;;  %v832_v7 = vmul.f32 %v2745_v28, %v804_v17  ;;  %v1198_v51 = vld [vmem:[#allocation2 + $0x80] sm:$0xff] (%p267_p13)  ;;  %v1199_v3 = vld [vmem:[#allocation2 + $0x90] sm:$0xff] (%p267_p13) }
  0xc3   : >> { %v1154_v5 = vadd.f32 %v1130_v56, %v1106_v57  ;;  %v855_v6 = vadd.f32 %v831_v55, %v729_v58  ;;  %v1056_v24 = vsel %vm983_vm6, %v1029_v45, %v984_v40  ;;  %v958_v16 = vmul.f32 %v2760_v37, %v930_v14  ;;  %v1187_v37 = vld [vmem:[#allocation2] sm:$0xff] (%p267_p13)  ;;  %v1189_v40 = vld [vmem:[#allocation2 + $0x18] sm:$0xff] (%p267_p13) }
  0xc4   : >> { %v604_v15 = vadd.f32 %v580_v13, %v478_v19  ;;  %v1084_v21 = vmul.f32 %v2767_v43, %v1056_v24  ;;  %v3314_v43 = vadd.f32 (%p267_p13), %v2150_v11, %v1187_v37  ;;  %v3316_v20 = vadd.f32 (%p267_p13), %v2150_v11, %v1189_v40  ;;  %v1200_v57 = vld [vmem:[#allocation2 + $0x98] sm:$0xff] (%p267_p13) }
  0xc5   : >> { %1178 = vst.msk [vmem:[#allocation2 + $0xa8] sm:$0xff] %vm240_vm0, %v1154_v5  ;;  %v981_v2 = vadd.f32 %v957_v0, %v855_v6  ;;  %v3318_v23 = vadd.f32 (%p267_p13), %v2150_v11, %v1188_v30  ;;  %v3320_v31 = vadd.f32 (%p267_p13), %v2150_v11, %v1190_v27  ;;  %v3330_v38 = vadd.f32 (%p267_p13), %v2150_v11, %v1191_v33 }
  0xc6   : >> { %v730_v10 = vadd.f32 %v706_v1, %v604_v15  ;;  %v1223_v29 = vsel (%p267_p13), %vm240_vm0, %v3314_v43, 0.0  ;;  %v1229_v35 = vsel (%p267_p13), %vm240_vm0, %v3316_v20, 0.0  ;;  %v3332_v36 = vadd.f32 (%p267_p13), %v2150_v11, %v1192_v34 }
  0xc7   : >> { %v1107_v8 = vadd.f32 %v1083_v22, %v981_v2  ;;  %1224 = vadd.xlane.f32.xlu0 (%p267_p13), %v1223_v29  ;;  %1230 = vadd.xlane.f32.xlu1 (%p267_p13), %v1229_v35  ;;  %v1226_v46 = vsel (%p267_p13), %vm240_vm0, %v3318_v23, 0.0  ;;  %v1232_v44 = vsel (%p267_p13), %vm240_vm0, %v3320_v31, 0.0  ;;  %v3334_v47 = vadd.f32 (%p267_p13), %v2150_v11, %v1193_v39 }
  0xc8   : >> { %v856_v25 = vadd.f32 %v832_v7, %v730_v10  ;;  %v3336_v41 = vadd.f32 (%p267_p13), %v2150_v11, %v1194_v42  ;;  %v1235_v52 = vsel (%p267_p13), %vm240_vm0, %v3330_v38, 0.0  ;;  %v1238_v45 = vsel (%p267_p13), %vm240_vm0, %v3332_v36, 0.0 }
  0xc9   : >> { %v1155_v12 = vadd.f32 %v1131_v9, %v1107_v8  ;;  %v1241_v50 = vsel (%p267_p13), %vm240_vm0, %v3334_v47, 0.0  ;;  %v3346_v54 = vadd.f32 (%p267_p13), %v2150_v11, %v1195_v48  ;;  %v3348_v55 = vadd.f32 (%p267_p13), %v2150_v11, %v1196_v49 }
  0xca   : >> { %v982_v32 = vadd.f32 %v958_v16, %v856_v25  ;;  %v1244_v53 = vsel (%p267_p13), %vm240_vm0, %v3336_v41, 0.0  ;;  %v3354_v61 = vadd.f32 (%p267_p13), %v2150_v11, %v1197_v59  ;;  %v3356_v62 = vadd.f32 (%p267_p13), %v2150_v11, %v1198_v51 }
  0xcb   : >> { %1179 = vst.msk [vmem:[#allocation2 + $0xb0] sm:$0xff] %vm240_vm0, %v1155_v12  ;;  %1227 = vadd.xlane.f32.xlu0 (%p267_p13), %v1226_v46  ;;  %1233 = vadd.xlane.f32.xlu1 (%p267_p13), %v1232_v44  ;;  %v1247_v56 = vsel (%p267_p13), %vm240_vm0, %v3346_v54, 0.0  ;;  %v1250_v60 = vsel (%p267_p13), %vm240_vm0, %v3348_v55, 0.0  ;;  %v3362_v13 = vadd.f32 (%p267_p13), %v2150_v11, %v1199_v3  ;;  %v3364_v58 = vadd.f32 (%p267_p13), %v2150_v11, %v1200_v57 }
  0xcc   : >> { %v1108_v26 = vadd.f32 %v1084_v21, %v982_v32  ;;  %269 = sbr.rel (!%p267_p13) target bundleno = 35 (0x23), region = 85  ;;  %v1253_v63 = vsel (%p267_p13), %vm240_vm0, %v3354_v61, 0.0  ;;  %v1256_v4 = vsel (%p267_p13), %vm240_vm0, %v3356_v62, 0.0  ;;  %v1201_v0 = vld [vmem:[#allocation2 + $0xa8] sm:$0xff] (%p267_p13) }
  0xcd   : > { %v1259_v5 = vsel (%p267_p13), %vm240_vm0, %v3362_v13, 0.0  ;;  %v1262_v19 = vsel (%p267_p13), %vm240_vm0, %v3364_v58, 0.0  ;;  %v3370_v1 = vadd.f32 (%p267_p13), %v2150_v11, %v1201_v0 }
  0xce   : >> { %v1156_v28 = vadd.f32 %v1132_v18, %v1108_v26 }
  0xcf   : > { %1236 = vadd.xlane.f32.xlu0 (%p267_p13), %v1235_v52  ;;  %1239 = vadd.xlane.f32.xlu1 (%p267_p13), %v1238_v45  ;;  %v1265_v22 = vsel (%p267_p13), %vm240_vm0, %v3370_v1, 0.0 }
  0xd0   : >> { %1180 = vst.msk [vmem:[#allocation2 + $0xb8] sm:$0xff] %vm240_vm0, %v1156_v28 }
  0xd2   : > { %v1202_v17 = vld [vmem:[#allocation2 + $0xb0] sm:$0xff] }
  0xd3   : > { %1242 = vadd.xlane.f32.xlu0 %v1241_v50  ;;  %1245 = vadd.xlane.f32.xlu1 %v1244_v53  ;;  %v3372_v6 = vadd.f32 %v2150_v11, %v1202_v17 }
  0xd5   : > { %v1268_v14 = vsel %vm240_vm0, %v3372_v6, 0.0 }
  0xd7   : > { %1248 = vadd.xlane.f32.xlu0 %v1247_v56  ;;  %1251 = vadd.xlane.f32.xlu1 %v1250_v60 }
  0xdb   : > { %1254 = vadd.xlane.f32.xlu0 %v1253_v63  ;;  %1257 = vadd.xlane.f32.xlu1 %v1256_v4 }
  0xdf   : > { %1260 = vadd.xlane.f32.xlu0 %v1259_v5  ;;  %1263 = vadd.xlane.f32.xlu1 %v1262_v19 }
  0xe3   : > { %1266 = vadd.xlane.f32.xlu0 %v1265_v22  ;;  %1269 = vadd.xlane.f32.xlu1 %v1268_v14 }
 0x150   : > { %v1225_v15 = vpop.xlane.xlu0 %1224  ;;  %v1231_v7 = vpop.xlane.xlu1 %1230 }
 0x151   : > { %v1272_v2 = vmul.f32 0.03125, %v1225_v15  ;;  %v1274_v24 = vmul.f32 0.03125, %v1231_v7 }
 0x153   : > { %v3379_v9 = vsub.f32 %v3314_v43, %v1272_v2  ;;  %v3382_v10 = vsub.f32 %v3316_v20, %v1274_v24 }
 0x154   : > { %v1228_v16 = vpop.xlane.xlu0 %1227  ;;  %v1234_v8 = vpop.xlane.xlu1 %1233 }
 0x155   : > { %v1273_v25 = vmul.f32 0.03125, %v1228_v16  ;;  %v1275_v21 = vmul.f32 0.03125, %v1234_v8  ;;  %v1304_v12 = vmul.f32 %v3379_v9, %v3379_v9  ;;  %v1306_v32 = vmul.f32 %v3382_v10, %v3382_v10 }
 0x157   : > { %v3389_v18 = vsub.f32 %v3318_v23, %v1273_v25  ;;  %v3392_v26 = vsub.f32 %v3320_v31, %v1275_v21  ;;  %v1320_v28 = vsel %vm240_vm0, %v1304_v12, 0.0  ;;  %v1326_v40 = vsel %vm240_vm0, %v1306_v32, 0.0 }
 0x158   : > { %1321 = vadd.xlane.f32.xlu0 %v1320_v28  ;;  %v1237_v11 = vpop.xlane.xlu0 %1236  ;;  %v1240_v37 = vpop.xlane.xlu1 %1239 }
 0x159   : > { %v1276_v43 = vmul.f32 0.03125, %v1237_v11  ;;  %v1277_v20 = vmul.f32 0.03125, %v1240_v37  ;;  %v1305_v30 = vmul.f32 %v3389_v18, %v3389_v18  ;;  %v1307_v27 = vmul.f32 %v3392_v26, %v3392_v26 }
 0x15b   : > { %v3401_v23 = vsub.f32 %v3330_v38, %v1276_v43  ;;  %v3404_v31 = vsub.f32 %v3332_v36, %v1277_v20  ;;  %v1323_v33 = vsel %vm240_vm0, %v1305_v30, 0.0  ;;  %v1329_v35 = vsel %vm240_vm0, %v1307_v27, 0.0  ;;  %v2384_v27 = vld [vmem:[%s3807_s3] sm:$0xff]  }
 0x15c   : > { %1327 = vadd.xlane.f32.xlu0 %v1326_v40  ;;  %1324 = vadd.xlane.f32.xlu1 %v1323_v33  ;;  %v1243_v34 = vpop.xlane.xlu0 %1242  ;;  %v1246_v29 = vpop.xlane.xlu1 %1245 }
 0x15d   : > { %v1278_v39 = vmul.f32 0.03125, %v1243_v34  ;;  %v1279_v42 = vmul.f32 0.03125, %v1246_v29  ;;  %v1308_v46 = vmul.f32 %v3401_v23, %v3401_v23  ;;  %v1309_v44 = vmul.f32 %v3404_v31, %v3404_v31 }
 0x15f   : > { %v3413_v38 = vsub.f32 %v3334_v47, %v1278_v39  ;;  %v3416_v36 = vsub.f32 %v3336_v41, %v1279_v42  ;;  %v1332_v48 = vsel %vm240_vm0, %v1308_v46, 0.0  ;;  %v1335_v45 = vsel %vm240_vm0, %v1309_v44, 0.0 }
 0x160   : > { %1330 = vadd.xlane.f32.xlu1 %v1329_v35  ;;  %1333 = vadd.xlane.f32.xlu0 %v1332_v48  ;;  %v1249_v49 = vpop.xlane.xlu0 %1248  ;;  %v1252_v52 = vpop.xlane.xlu1 %1251 }
 0x161   : > { %v1280_v50 = vmul.f32 0.03125, %v1249_v49  ;;  %v1281_v53 = vmul.f32 0.03125, %v1252_v52  ;;  %v1310_v59 = vmul.f32 %v3413_v38, %v3413_v38  ;;  %v1311_v47 = vmul.f32 %v3416_v36, %v3416_v36 }
 0x163   : > { %v3425_v51 = vsub.f32 %v3346_v54, %v1280_v50  ;;  %v3428_v41 = vsub.f32 %v3348_v55, %v1281_v53  ;;  %v1338_v56 = vsel %vm240_vm0, %v1310_v59, 0.0  ;;  %v1341_v57 = vsel %vm240_vm0, %v1311_v47, 0.0 }
 0x164   : > { %1336 = vadd.xlane.f32.xlu1 %v1335_v45  ;;  %1339 = vadd.xlane.f32.xlu0 %v1338_v56  ;;  %v1255_v60 = vpop.xlane.xlu0 %1254  ;;  %v1258_v3 = vpop.xlane.xlu1 %1257 }
 0x165   : > { %v1282_v63 = vmul.f32 0.03125, %v1255_v60  ;;  %v1283_v4 = vmul.f32 0.03125, %v1258_v3  ;;  %v1312_v0 = vmul.f32 %v3425_v51, %v3425_v51  ;;  %v1313_v54 = vmul.f32 %v3428_v41, %v3428_v41 }
 0x167   : > { %v3437_v17 = vsub.f32 %v3354_v61, %v1282_v63  ;;  %v3440_v55 = vsub.f32 %v3356_v62, %v1283_v4  ;;  %v1344_v5 = vsel %vm240_vm0, %v1312_v0, 0.0  ;;  %v1347_v14 = vsel %vm240_vm0, %v1313_v54, 0.0 }
 0x168   : > { %1342 = vadd.xlane.f32.xlu1 %v1341_v57  ;;  %1345 = vadd.xlane.f32.xlu0 %v1344_v5  ;;  %v1261_v19 = vpop.xlane.xlu0 %1260  ;;  %v1264_v22 = vpop.xlane.xlu1 %1263 }
 0x169   : > { %v1284_v15 = vmul.f32 0.03125, %v1261_v19  ;;  %v1285_v7 = vmul.f32 0.03125, %v1264_v22  ;;  %v1314_v2 = vmul.f32 %v3437_v17, %v3437_v17  ;;  %v1315_v61 = vmul.f32 %v3440_v55, %v3440_v55 }
 0x16b   : > { %v3449_v24 = vsub.f32 %v3362_v13, %v1284_v15  ;;  %v3452_v62 = vsub.f32 %v3364_v58, %v1285_v7  ;;  %v1350_v16 = vsel %vm240_vm0, %v1314_v2, 0.0  ;;  %v1353_v21 = vsel %vm240_vm0, %v1315_v61, 0.0  ;;  %v3483_v15 = vld [vmem:[%s3806_s2 + $0x1] ss:$0 sm:$0xff] }
 0x16c   : > { %1348 = vadd.xlane.f32.xlu1 %v1347_v14  ;;  %1351 = vadd.xlane.f32.xlu0 %v1350_v16  ;;  %v1267_v8 = vpop.xlane.xlu0 %1266  ;;  %v1270_v25 = vpop.xlane.xlu1 %1269 }
 0x16d   : > { %v1286_v12 = vmul.f32 0.03125, %v1267_v8  ;;  %v1287_v32 = vmul.f32 0.03125, %v1270_v25  ;;  %v1316_v28 = vmul.f32 %v3449_v24, %v3449_v24  ;;  %v1317_v13 = vmul.f32 %v3452_v62, %v3452_v62 }
 0x16f   : > { %v3461_v11 = vsub.f32 %v3370_v1, %v1286_v12  ;;  %v3464_v58 = vsub.f32 %v3372_v6, %v1287_v32  ;;  %v1356_v37 = vsel %vm240_vm0, %v1316_v28, 0.0  ;;  %v1359_v40 = vsel %vm240_vm0, %v1317_v13, 0.0  ;;  %v2383_v6 = vld [vmem:[%s3807_s3 + $0x8] sm:$0xff]   ;;  %v3490_v13 = vld [vmem:[%s3806_s2 + $0x2] ss:$0 sm:$0xff] }
 0x170   : > { %1354 = vadd.xlane.f32.xlu1 %v1353_v21  ;;  %1357 = vadd.xlane.f32.xlu0 %v1356_v37 }
 0x171   : > { %v1318_v43 = vmul.f32 %v3461_v11, %v3461_v11  ;;  %v1319_v20 = vmul.f32 %v3464_v58, %v3464_v58  ;;  %2232 = vmatprep.subr.bf16.mxu0 %v2383_v6 }
 0x172   : > { %2233 = vmatpush3.bf16.msra.mxu0 %v2383_v6 }
 0x173   : > { %v1362_v30 = vsel %vm240_vm0, %v1318_v43, 0.0  ;;  %v1365_v1 = vsel %vm240_vm0, %v1319_v20, 0.0  ;;  %2234 = vmatprep.subr.bf16.mxu0 %v2384_v27 }
 0x174   : > { %1360 = vadd.xlane.f32.xlu1 %v1359_v40  ;;  %1363 = vadd.xlane.f32.xlu0 %v1362_v30 }
 0x176   : > { %2235 = vmatpush3.bf16.msra.mxu0 %v2384_v27 }
 0x178   : > { %1366 = vadd.xlane.f32.xlu1 %v1365_v1 }
 0x1e1   : > { %v1322_v33 = vpop.xlane.xlu0 %1321 }
 0x1e2   : > { %v1368_v34 = vmul.f32 0.03125, %v1322_v33 }
 0x1e4   : > { %v1384_v29 = vadd.f32 1e-06, %v1368_v34 }
 0x1e5   : > { %v1325_v35 = vpop.xlane.xlu1 %1324  ;;  %v1328_v39 = vpop.xlane.xlu0 %1327 }
 0x1e6   : > { %2393 = vrsqrt.f32 %v1384_v29  ;;  %v1369_v42 = vmul.f32 0.03125, %v1325_v35  ;;  %v1370_v46 = vmul.f32 0.03125, %v1328_v39 }
 0x1e8   : > { %v1385_v44 = vadd.f32 1e-06, %v1369_v42  ;;  %v1386_v48 = vadd.f32 1e-06, %v1370_v46 }
 0x1e9   : > { %v1331_v49 = vpop.xlane.xlu1 %1330  ;;  %v1334_v52 = vpop.xlane.xlu0 %1333 }
 0x1ea   : > { %2395 = vrsqrt.f32 %v1385_v44  ;;  %v1371_v45 = vmul.f32 0.03125, %v1331_v49  ;;  %v1372_v50 = vmul.f32 0.03125, %v1334_v52 }
 0x1eb   : > { %2397 = vrsqrt.f32 %v1386_v48 }
 0x1ec   : > { %v1387_v53 = vadd.f32 1e-06, %v1371_v45  ;;  %v1388_v59 = vadd.f32 1e-06, %v1372_v50 }
 0x1ed   : > { %v1337_v47 = vpop.xlane.xlu1 %1336  ;;  %v1340_v56 = vpop.xlane.xlu0 %1339 }
 0x1ee   : > { %2399 = vrsqrt.f32 %v1387_v53  ;;  %v1373_v60 = vmul.f32 0.03125, %v1337_v47  ;;  %v1374_v3 = vmul.f32 0.03125, %v1340_v56 }
 0x1ef   : > { %2401 = vrsqrt.f32 %v1388_v59 }
 0x1f0   : > { %v1389_v57 = vadd.f32 1e-06, %v1373_v60  ;;  %v1390_v63 = vadd.f32 1e-06, %v1374_v3 }
 0x1f1   : > { %v1343_v4 = vpop.xlane.xlu1 %1342  ;;  %v1346_v0 = vpop.xlane.xlu0 %1345 }
 0x1f2   : > { %2403 = vrsqrt.f32 %v1389_v57  ;;  %v1375_v54 = vmul.f32 0.03125, %v1343_v4  ;;  %v1376_v5 = vmul.f32 0.03125, %v1346_v0 }
 0x1f3   : > { %v2394_v19 = vpop.eup %2393  ;;  %2405 = vrsqrt.f32 %v1390_v63 }
 0x1f4   : > { %v1391_v22 = vadd.f32 1e-06, %v1375_v54  ;;  %v1392_v14 = vadd.f32 1e-06, %v1376_v5  ;;  %v1416_v7 = vmul.f32 %v2394_v19, %v3379_v9 }
 0x1f5   : > { %v1349_v2 = vpop.xlane.xlu1 %1348  ;;  %v1352_v61 = vpop.xlane.xlu0 %1351 }
 0x1f6   : > { %2407 = vrsqrt.f32 %v1391_v22  ;;  %v1377_v16 = vmul.f32 0.03125, %v1349_v2  ;;  %v1378_v8 = vmul.f32 0.03125, %v1352_v61  ;;  %v1436_v21 = vmul.f32 %v3483_v15, %v1416_v7 }
 0x1f7   : > { %v2396_v25 = vpop.eup %2395  ;;  %2409 = vrsqrt.f32 %v1392_v14 }
 0x1f8   : > { %v2398_v12 = vpop.eup %2397  ;;  %v1393_v32 = vadd.f32 1e-06, %v1377_v16  ;;  %v1394_v28 = vadd.f32 1e-06, %v1378_v8  ;;  %v1417_v37 = vmul.f32 %v2396_v25, %v3389_v18  ;;  %v1456_v27 = vadd.f32 %v3490_v13, %v1436_v21 }
 0x1f9   : > { %v1355_v9 = vpop.xlane.xlu1 %1354  ;;  %v1358_v40 = vpop.xlane.xlu0 %1357  ;;  %v1418_v43 = vmul.f32 %v2398_v12, %v3382_v10 }
 0x1fa   : > { %2411 = vrsqrt.f32 %v1393_v32  ;;  %v1379_v20 = vmul.f32 0.03125, %v1355_v9  ;;  %v1380_v30 = vmul.f32 0.03125, %v1358_v40  ;;  %v1437_v1 = vmul.f32 %v3483_v15, %v1417_v37 }
 0x1fb   : > { %v2400_v6 = vpop.eup %2399  ;;  %2413 = vrsqrt.f32 %v1394_v28  ;;  %v1438_v10 = vmul.f32 %v3483_v15, %v1418_v43 }
 0x1fc   : > { %v2402_v33 = vpop.eup %2401  ;;  %v1395_v34 = vadd.f32 1e-06, %v1379_v20  ;;  %v1396_v29 = vadd.f32 1e-06, %v1380_v30  ;;  %v1457_v35 = vadd.f32 %v3490_v13, %v1437_v1  ;;  %v1419_v18 = vmul.f32 %v2400_v6, %v3392_v26 }
 0x1fd   : > { %v1361_v39 = vpop.xlane.xlu1 %1360  ;;  %v1364_v42 = vpop.xlane.xlu0 %1363  ;;  %v1420_v46 = vmul.f32 %v2402_v33, %v3401_v23  ;;  %v1458_v23 = vadd.f32 %v3490_v13, %v1438_v10 }
 0x1fe   : > { %2415 = vrsqrt.f32 %v1395_v34  ;;  %v1381_v44 = vmul.f32 0.03125, %v1361_v39  ;;  %v1382_v48 = vmul.f32 0.03125, %v1364_v42  ;;  %v1472_v49 = vpack.c.bf16 %v1457_v35, %v1456_v27 }
 0x1ff   : > { %v2404_v52 = vpop.eup %2403  ;;  %2417 = vrsqrt.f32 %v1396_v29  ;;  %v1439_v45 = vmul.f32 %v3483_v15, %v1419_v18  ;;  %v1440_v50 = vmul.f32 %v3483_v15, %v1420_v46 }
 0x200   : > { %v2406_v53 = vpop.eup %2405  ;;  %v1397_v59 = vadd.f32 1e-06, %v1381_v44  ;;  %v1398_v47 = vadd.f32 1e-06, %v1382_v48  ;;  %2236 = vmatprep.mubr.msk.bf16.mxu0 %vm240_vm0, %v1472_v49  ;;  %v1421_v26 = vmul.f32 %v2404_v52, %v3404_v31  ;;  %v2388_v52 = vld [vmem:[%s3808_s4 + $0x20] sm:$0xff]  }
 0x201   : > { %v1367_v56 = vpop.xlane.xlu1 %1366  ;;  %v1459_v60 = vadd.f32 %v3490_v13, %v1439_v45  ;;  %v1422_v3 = vmul.f32 %v2406_v53, %v3413_v38  ;;  %v1460_v54 = vadd.f32 %v3490_v13, %v1440_v50  ;;  %v2389_v45 = vld [vmem:[%s3808_s4 + $0x18] sm:$0xff]   ;;  %v2390_v50 = vld [vmem:[%s3808_s4 + $0x10] sm:$0xff]   ;;  %v2391_v53 = vld [vmem:[%s3808_s4 + $0x8] sm:$0xff]  }
 0x202   : > { %2419 = vrsqrt.f32 %v1397_v59  ;;  %v1383_v57 = vmul.f32 0.03125, %v1367_v56  ;;  %v1441_v63 = vmul.f32 %v3483_v15, %v1421_v26  ;;  %v2392_v59 = vld [vmem:[%s3808_s4] sm:$0xff]  }
 0x203   : > { %v2408_v4 = vpop.eup %2407  ;;  %2421 = vrsqrt.f32 %v1398_v47  ;;  %v1473_v0 = vpack.c.bf16 %v1459_v60, %v1458_v23  ;;  %v1442_v14 = vmul.f32 %v3483_v15, %v1422_v3  ;;  %v3573_v47 = vld [vmem:[%s3806_s2 + $0x3] ss:$0 sm:$0xff] }
 0x204   : > { %v2410_v5 = vpop.eup %2409  ;;  %v1399_v19 = vadd.f32 1e-06, %v1383_v57  ;;  %v1461_v31 = vadd.f32 %v3490_v13, %v1441_v63  ;;  %v1423_v22 = vmul.f32 %v2408_v4, %v3416_v36 }
 0x205   : > { %2237 = vmatmul.mubr.msk.bf16.vlgmr.msra.gmra.mxu0 %vm240_vm0, %v1473_v0  ;;  %v1424_v38 = vmul.f32 %v2410_v5, %v3425_v51  ;;  %v1462_v8 = vadd.f32 %v3490_v13, %v1442_v14 }
 0x206   : > { %2423 = vrsqrt.f32 %v1399_v19  ;;  %v1474_v7 = vpack.c.bf16 %v1461_v31, %v1460_v54  ;;  %v1443_v2 = vmul.f32 %v3483_v15, %v1423_v22 }
 0x207   : > { %v2412_v61 = vpop.eup %2411  ;;  %v1444_v21 = vmul.f32 %v3483_v15, %v1424_v38 }
 0x208   : > { %v2414_v16 = vpop.eup %2413  ;;  %2240 = vmatprep.mubr.msk.bf16.mxu0 %vm240_vm0, %v1474_v7  ;;  %v1463_v25 = vadd.f32 %v3490_v13, %v1443_v2  ;;  %v1425_v36 = vmul.f32 %v2412_v61, %v3428_v41 }
 0x209   : > { %v1426_v12 = vmul.f32 %v2414_v16, %v3437_v17  ;;  %v1464_v9 = vadd.f32 %v3490_v13, %v1444_v21 }
 0x20a   : > { %v1475_v32 = vpack.c.bf16 %v1463_v25, %v1462_v8  ;;  %v1445_v51 = vmul.f32 %v3483_v15, %v1425_v36 }
 0x20b   : > { %v2416_v28 = vpop.eup %2415  ;;  %v1446_v20 = vmul.f32 %v3483_v15, %v1426_v12 }
 0x20c   : > { %v2418_v37 = vpop.eup %2417  ;;  %v1465_v40 = vadd.f32 %v3490_v13, %v1445_v51  ;;  %v1427_v43 = vmul.f32 %v2416_v28, %v3440_v55 }
 0x20d   : > { %2241 = vmatmul.mubr.msk.bf16.gmra.mxu0 %vm240_vm0, %v1475_v32  ;;  %v1428_v41 = vmul.f32 %v2418_v37, %v3449_v24  ;;  %v1466_v27 = vadd.f32 %v3490_v13, %v1446_v20 }
 0x20e   : > { %v1476_v30 = vpack.c.bf16 %v1465_v40, %v1464_v9  ;;  %v1447_v17 = vmul.f32 %v3483_v15, %v1427_v43 }
 0x20f   : > { %v2420_v1 = vpop.eup %2419  ;;  %v1448_v55 = vmul.f32 %v3483_v15, %v1428_v41 }
 0x210   : > { %v2422_v6 = vpop.eup %2421  ;;  %2244 = vmatprep.mubr.msk.bf16.mxu0 %vm240_vm0, %v1476_v30  ;;  %v1467_v33 = vadd.f32 %v3490_v13, %v1447_v17  ;;  %v1429_v34 = vmul.f32 %v2420_v1, %v3452_v62 }
 0x211   : > { %v1430_v29 = vmul.f32 %v2422_v6, %v3461_v11  ;;  %v1468_v39 = vadd.f32 %v3490_v13, %v1448_v55 }
 0x212   : > { %v1477_v35 = vpack.c.bf16 %v1467_v33, %v1466_v27  ;;  %v1449_v24 = vmul.f32 %v3483_v15, %v1429_v34 }
 0x213   : > { %v2424_v18 = vpop.eup %2423  ;;  %v1450_v46 = vmul.f32 %v3483_v15, %v1430_v29 }
 0x214   : > { %v1469_v42 = vadd.f32 %v3490_v13, %v1449_v24  ;;  %v1431_v10 = vmul.f32 %v2424_v18, %v3464_v58  ;;  %v2385_v58 = vld [vmem:[%s3808_s4 + $0x38] sm:$0xff]  }
 0x215   : > { %2245 = vmatmul.mubr.msk.bf16.gmra.mxu0 %vm240_vm0, %v1477_v35  ;;  %v1470_v11 = vadd.f32 %v3490_v13, %v1450_v46  ;;  %2252 = vmatprep.subr.bf16.mxu0 %v2385_v58 }
 0x216   : > { %v1478_v44 = vpack.c.bf16 %v1469_v42, %v1468_v39  ;;  %v1451_v62 = vmul.f32 %v3483_v15, %v1431_v10  ;;  %2284 = vmatprep.subr.bf16.mxu1 %v2385_v58  ;;  %2253 = vmatpush3.bf16.msra.mxu0 %v2385_v58  ;;  %v2386_v15 = vld [vmem:[%s3808_s4 + $0x30] sm:$0xff]  }
 0x217   : > { %2292 = vmatpush3.bf16.msra.mxu1 %v2385_v58  ;;  %2254 = vmatprep.subr.bf16.mxu0 %v2386_v15 }
 0x218   : > { %2248 = vmatprep.mubr.msk.bf16.mxu0 %vm240_vm0, %v1478_v44  ;;  %v1471_v48 = vadd.f32 %v3490_v13, %v1451_v62  ;;  %2285 = vmatprep.subr.bf16.mxu1 %v2386_v15  ;;  %v2387_v13 = vld [vmem:[%s3808_s4 + $0x28] sm:$0xff]  }
 0x21a   : > { %v1479_v49 = vpack.c.bf16 %v1471_v48, %v1470_v11  ;;  %2255 = vmatpush3.bf16.msra.mxu0 %v2386_v15 }
 0x21b   : > { %2293 = vmatpush3.bf16.msra.mxu1 %v2386_v15  ;;  %2256 = vmatprep.subr.bf16.mxu0 %v2387_v13 }
 0x21c   : > { %2286 = vmatprep.subr.bf16.mxu1 %v2387_v13 }
 0x21d   : > { %2249 = vmatmul.mubr.msk.bf16.gmra.mxu0 %vm240_vm0, %v1479_v49 }
 0x21e   : > { %2257 = vmatpush3.bf16.msra.mxu0 %v2387_v13 }
 0x21f   : > { %2294 = vmatpush3.bf16.msra.mxu1 %v2387_v13  ;;  %2258 = vmatprep.subr.bf16.mxu0 %v2388_v52 }
 0x220   : > { %2287 = vmatprep.subr.bf16.mxu1 %v2388_v52 }
 0x222   : > { %2259 = vmatpush3.bf16.msra.mxu0 %v2388_v52 }
 0x223   : > { %2295 = vmatpush3.bf16.msra.mxu1 %v2388_v52  ;;  %2260 = vmatprep.subr.bf16.mxu0 %v2389_v45 }
 0x224   : > { %2288 = vmatprep.subr.bf16.mxu1 %v2389_v45 }
 0x226   : > { %2261 = vmatpush3.bf16.msra.mxu0 %v2389_v45 }
 0x227   : > { %2296 = vmatpush3.bf16.msra.mxu1 %v2389_v45  ;;  %2262 = vmatprep.subr.bf16.mxu0 %v2390_v50 }
 0x228   : > { %2289 = vmatprep.subr.bf16.mxu1 %v2390_v50 }
 0x22a   : > { %2263 = vmatpush3.bf16.msra.mxu0 %v2390_v50 }
 0x22b   : > { %2297 = vmatpush3.bf16.msra.mxu1 %v2390_v50  ;;  %2264 = vmatprep.subr.bf16.mxu0 %v2391_v53 }
 0x22c   : > { %2290 = vmatprep.subr.bf16.mxu1 %v2391_v53 }
 0x22e   : > { %2265 = vmatpush3.bf16.msra.mxu0 %v2391_v53 }
 0x22f   : > { %2298 = vmatpush3.bf16.msra.mxu1 %v2391_v53  ;;  %2266 = vmatprep.subr.bf16.mxu0 %v2392_v59 }
 0x230   : > { %2291 = vmatprep.subr.bf16.mxu1 %v2392_v59 }
 0x232   : > { %2267 = vmatpush3.bf16.msra.mxu0 %v2392_v59 }
 0x233   : > { %2299 = vmatpush3.bf16.msra.mxu1 %v2392_v59 }
 0x2c5   : > { %v2238_v26 = vpop.f32.mrf.mxu0 }
 0x2c6   : > { %v1567_v56 = vadd.f32 %v2238_v26, %v3573_v47 }
 0x2c7   : > { %v1558_v23 = vpop.f32.mrf.mxu0 }
 0x2c8   : > { %v1559_v60 = vadd.f32 %v3573_v47, %v1558_v23  ;;  %v1639_v3 = vmul.f32 0.70710677, %v1567_v56  ;;  %v1623_v10 = vmul.f32 0.5, %v1567_v56 }
 0x2c9   : > { %v2239_v57 = vpop.f32.mrf.mxu0 }
 0x2ca   : > { %v1637_v63 = vmul.f32 0.70710677, %v1559_v60  ;;  %v1570_v4 = vadd.f32 %v2239_v57, %v3573_v47  ;;  %v1621_v30 = vmul.f32 0.5, %v1559_v60 }
 0x2cb   : > { %v1561_v0 = vpop.f32.mrf.mxu0 }
 0x2cc   : > { %2425 = verf.f32 %v1637_v63  ;;  %v1640_v54 = vmul.f32 0.70710677, %v1570_v4  ;;  %v1562_v5 = vadd.f32 %v3573_v47, %v1561_v0  ;;  %v1624_v29 = vmul.f32 0.5, %v1570_v4 }
 0x2cd   : > { %2427 = verf.f32 %v1639_v3  ;;  %v2242_v19 = vpop.f32.mrf.mxu0 }
 0x2ce   : > { %2429 = verf.f32 %v1640_v54  ;;  %v1638_v31 = vmul.f32 0.70710677, %v1562_v5  ;;  %v3580_v22 = vadd.f32 %v2242_v19, %v3573_v47  ;;  %v1622_v18 = vmul.f32 0.5, %v1562_v5 }
 0x2cf   : > { %v1574_v14 = vpop.f32.mrf.mxu0 }
 0x2d0   : > { %2431 = verf.f32 %v1638_v31  ;;  %v1643_v38 = vmul.f32 0.70710677, %v3580_v22  ;;  %v3584_v7 = vadd.f32 %v3573_v47, %v1574_v14 }
 0x2d1   : > { %v2243_v2 = vpop.f32.mrf.mxu0 }
 0x2d2   : > { %v1641_v61 = vmul.f32 0.70710677, %v3584_v7  ;;  %v3588_v16 = vadd.f32 %v2243_v2, %v3573_v47  ;;  %2433 = verf.f32 %v1643_v38  ;;  %v1625_v19 = vmul.f32 0.5, %v3584_v7 }
 0x2d3   : > { %v1577_v8 = vpop.f32.mrf.mxu0  ;;  %v1627_v38 = vmul.f32 0.5, %v3580_v22 }
 0x2d4   : > { %v1644_v25 = vmul.f32 0.70710677, %v3588_v16  ;;  %v3592_v36 = vadd.f32 %v3573_v47, %v1577_v8  ;;  %2435 = verf.f32 %v1641_v61  ;;  %v1628_v54 = vmul.f32 0.5, %v3588_v16 }
 0x2d5   : > { %v2246_v21 = vpop.f32.mrf.mxu0 }
 0x2d6   : > { %2437 = verf.f32 %v1644_v25  ;;  %v1642_v12 = vmul.f32 0.70710677, %v3592_v36  ;;  %v3596_v32 = vadd.f32 %v2246_v21, %v3573_v47  ;;  %v1626_v31 = vmul.f32 0.5, %v3592_v36 }
 0x2d7   : > { %v1590_v51 = vpop.f32.mrf.mxu0 }
 0x2d8   : > { %2439 = verf.f32 %v1642_v12  ;;  %v1647_v28 = vmul.f32 0.70710677, %v3596_v32  ;;  %v3600_v9 = vadd.f32 %v3573_v47, %v1590_v51 }
 0x2d9   : > { %v2426_v37 = vpop.eup %2425  ;;  %v2247_v40 = vpop.f32.mrf.mxu0 }
 0x2da   : > { %v2428_v43 = vpop.eup %2427  ;;  %v3603_v20 = vadd.f32 %v2247_v40, %v3573_v47  ;;  %v1645_v17 = vmul.f32 0.70710677, %v3600_v9  ;;  %v1669_v6 = vadd.f32 1.0, %v2426_v37  ;;  %2441 = verf.f32 %v1647_v28 }
 0x2db   : > { %v2430_v41 = vpop.eup %2429  ;;  %v1593_v1 = vpop.f32.mrf.mxu0  ;;  %v1671_v55 = vadd.f32 1.0, %v2428_v43  ;;  %v1629_v22 = vmul.f32 0.5, %v3600_v9 }
 0x2dc   : > { %v1672_v27 = vadd.f32 1.0, %v2430_v41  ;;  %v1648_v33 = vmul.f32 0.70710677, %v3603_v20  ;;  %2443 = verf.f32 %v1645_v17  ;;  %v1594_v35 = vadd.f32 %v3573_v47, %v1593_v1 }
 0x2dd   : > { %v2432_v34 = vpop.eup %2431  ;;  %v2250_v24 = vpop.f32.mrf.mxu0  ;;  %v1685_v11 = vmul.f32 %v1669_v6, %v1621_v30  ;;  %v1687_v58 = vmul.f32 %v1671_v55, %v1623_v10  ;;  %v1632_v36 = vmul.f32 0.5, %v3603_v20  ;;  %v1631_v30 = vmul.f32 0.5, %v3596_v32 }
 0x2de   : > { %v1670_v39 = vadd.f32 1.0, %v2432_v34  ;;  %2445 = verf.f32 %v1648_v33  ;;  %v3609_v42 = vadd.f32 %v2250_v24, %v3573_v47  ;;  %v1688_v46 = vmul.f32 %v1672_v27, %v1624_v29 }
 0x2df   : > { %v1646_v44 = vmul.f32 0.70710677, %v1594_v35  ;;  %v1606_v62 = vpop.f32.mrf.mxu0  ;;  %v2434_v49 = vpop.eup %2433  ;;  %v1630_v43 = vmul.f32 0.5, %v1594_v35 }
 0x2e0   : > { %v1686_v48 = vmul.f32 %v1670_v39, %v1622_v18  ;;  %v1651_v15 = vmul.f32 0.70710677, %v3609_v42  ;;  %v1607_v13 = vadd.f32 %v3573_v47, %v1606_v62  ;;  %v1702_v26 = vpack.c.bf16 %v1688_v46, %v1687_v58 }
 0x2e1   : > { %2447 = verf.f32 %v1646_v44  ;;  %v2251_v52 = vpop.f32.mrf.mxu0  ;;  %v2436_v45 = vpop.eup %2435  ;;  %v1675_v0 = vadd.f32 1.0, %v2434_v49  ;;  %v1635_v44 = vmul.f32 0.5, %v3609_v42  ;;  %v2175_v42 = vld [vmem:[%s3625_s14 + $0x48] sm:$0xff] }
 0x2e2   : > { %v1618_v50 = vadd.f32 %v2251_v52, %v3573_v47  ;;  %v1701_v53 = vpack.c.bf16 %v1686_v48, %v1685_v11  ;;  %v1649_v56 = vmul.f32 0.70710677, %v1607_v13  ;;  %2449 = verf.f32 %v1651_v15  ;;  %v2179_v52 = vld [vmem:[%s3625_s14 + $0x68] sm:$0xff] }
 0x2e3   : > { %v2438_v59 = vpop.eup %2437  ;;  %v1609_v23 = vpop.f32.mrf.mxu0  ;;  %v1673_v4 = vadd.f32 1.0, %v2436_v45  ;;  %v1691_v21 = vmul.f32 %v1675_v0, %v1627_v38  ;;  %v1633_v20 = vmul.f32 0.5, %v1607_v13  ;;  %v2178_v13 = vld [vmem:[%s3625_s14 + $0x60] sm:$0xff]  ;;  %v2176_v45 = vld [vmem:[%s3625_s14 + $0x50] sm:$0xff] }
 0x2e4   : > { %v1676_v60 = vadd.f32 1.0, %v2438_v59  ;;  %v1652_v3 = vmul.f32 0.70710677, %v1618_v50  ;;  %v1610_v57 = vadd.f32 %v3573_v47, %v1609_v23  ;;  %2268 = vmatprep.mubr.bf16.mxu0 %v1701_v53  ;;  %2451 = verf.f32 %v1649_v56  ;;  %v3640_v56 = vld [vmem:[%s3806_s2 + $0x5] ss:$0 sm:$0xff] }
 0x2e5   : > { %v2440_v63 = vpop.eup %2439  ;;  %2269 = vmatmul.mubr.bf16.vlgmr.msra.gmra.mxu0 %v1702_v26  ;;  %v1689_v61 = vmul.f32 %v1673_v4, %v1625_v19  ;;  %v1636_v35 = vmul.f32 0.5, %v1618_v50  ;;  %v3634_v50 = vld [vmem:[%s3806_s2 + $0x4] ss:$0 sm:$0xff]  ;;  %v1931_v53 = vrot.slane %v2178_v13, 3  ;;  %v1932_v59 = vrot.slane %v2179_v52, 3  ;;  %v2180_v26 = vld [vmem:[%s3625_s14 + $0x70] sm:$0xff] }
 0x2e6   : > { %2453 = verf.f32 %v1652_v3  ;;  %v1650_v5 = vmul.f32 0.70710677, %v1610_v57  ;;  %v1674_v14 = vadd.f32 1.0, %v2440_v63  ;;  %v1692_v2 = vmul.f32 %v1676_v60, %v1628_v54  ;;  %v2177_v63 = vld [vmem:[%s3625_s14 + $0x58] sm:$0xff] }
 0x2e7   : > { %v2442_v47 = vpop.eup %2441  ;;  %v1634_v46 = vmul.f32 0.5, %v1610_v57  ;;  %v1926_v60 = vrot.slane %v2175_v42, 3  ;;  %v1927_v3 = vrot.slane %v2176_v45, 3  ;;  %v1933_v4 = vsel %vm605_vm3, %v1931_v53, %v1932_v59  ;;  %v2192_v53 = vld [vmem:[%s3625_s14 + $0xd0] sm:$0xff] }
 0x2e8   : > { %2455 = verf.f32 %v1650_v5  ;;  %v1690_v8 = vmul.f32 %v1674_v14, %v1626_v31  ;;  %v1704_v16 = vpack.c.bf16 %v1692_v2, %v1691_v21  ;;  %v1679_v7 = vadd.f32 1.0, %v2442_v47  ;;  %v2184_v31 = vld [vmem:[%s3625_s14 + $0x90] sm:$0xff]  ;;  %v2185_v47 = vld [vmem:[%s3625_s14 + $0x98] sm:$0xff] }
 0x2e9   : > { %v2444_v25 = vpop.eup %2443  ;;  %v1934_v54 = vrot.slane %v2180_v26, 3  ;;  %v1928_v14 = vsel %vm605_vm3, %v1926_v60, %v1927_v3  ;;  %v1929_v2 = vrot.slane %v2177_v63, 3 }
 0x2ea   : > { %v1703_v51 = vpack.c.bf16 %v1690_v8, %v1689_v61  ;;  %v1677_v37 = vadd.f32 1.0, %v2444_v25  ;;  %v1695_v34 = vmul.f32 %v1679_v7, %v1631_v30 }
 0x2eb   : > { %v2446_v12 = vpop.eup %2445  ;;  %v1935_v21 = vsel %vm605_vm3, %v1932_v59, %v1934_v54 }
 0x2ec   : > { %v1680_v28 = vadd.f32 1.0, %v2446_v12  ;;  %2272 = vmatprep.mubr.bf16.mxu1 %v1703_v51  ;;  %v1693_v6 = vmul.f32 %v1677_v37, %v1629_v22  ;;  %v1941_v51 = vrot.slane %v2184_v31, 3  ;;  %v1930_v22 = vsel %vm605_vm3, %v1927_v3, %v1929_v2  ;;  %v2197_v2 = vld [vmem:[%s3625_s14 + $0xf8] sm:$0xff] }
 0x2ed   : > { %2273 = vmatmul.mubr.bf16.vlgmr.msra.gmra.mxu1 %v1704_v16  ;;  %v2182_v16 = vld [vmem:[%s3625_s14 + $0x80] sm:$0xff] }
 0x2ee   : > { %v2448_v40 = vpop.eup %2447  ;;  %v1696_v17 = vmul.f32 %v1680_v28, %v1632_v36  ;;  %v2181_v28 = vld [vmem:[%s3625_s14 + $0x78] sm:$0xff]  ;;  %v1942_v36 = vrot.slane %v2185_v47, 3 }
 0x2ef   : > { %v1678_v41 = vadd.f32 1.0, %v2448_v40  ;;  %v2450_v1 = vpop.eup %2449 }
 0x2f0   : > { %v1706_v39 = vpack.c.bf16 %v1696_v17, %v1695_v34  ;;  %v1683_v9 = vadd.f32 1.0, %v2450_v1  ;;  %v1936_v1 = vrot.slane %v2181_v28, 3  ;;  %v2194_v28 = vld [vmem:[%s3625_s14 + $0xe0] sm:$0xff] }
 0x2f1   : > { %v1694_v27 = vmul.f32 %v1678_v41, %v1630_v43  ;;  %v2452_v33 = vpop.eup %2451  ;;  %v2186_v43 = vld [vmem:[%s3625_s14 + $0xa0] sm:$0xff] }
 0x2f2   : > { %v1681_v24 = vadd.f32 1.0, %v2452_v33  ;;  %v1699_v49 = vmul.f32 %v1683_v9, %v1635_v44  ;;  %v2183_v33 = vld [vmem:[%s3625_s14 + $0x88] sm:$0xff] }
 0x2f3   : > { %v2454_v55 = vpop.eup %2453  ;;  %v1705_v29 = vpack.c.bf16 %v1694_v27, %v1693_v6  ;;  %v1937_v6 = vrot.slane %v2182_v16, 3 }
 0x2f4   : > { %v1684_v18 = vadd.f32 1.0, %v2454_v55  ;;  %v1697_v62 = vmul.f32 %v1681_v24, %v1633_v20  ;;  %v1943_v55 = vsel %vm605_vm3, %v1941_v51, %v1942_v36  ;;  %v1944_v24 = vrot.slane %v2186_v43, 3  ;;  %v2191_v20 = vld [vmem:[%s3625_s14 + $0xc8] sm:$0xff]  ;;  %v2193_v51 = vld [vmem:[%s3625_s14 + $0xd8] sm:$0xff] }
 0x2f5   : > { %v2456_v10 = vpop.eup %2455  ;;  %2276 = vmatprep.mubr.bf16.mxu1 %v1705_v29  ;;  %v1938_v9 = vsel %vm605_vm3, %v1936_v1, %v1937_v6  ;;  %v1952_v13 = vrot.slane %v2191_v20, 3  ;;  %v1956_v1 = vrot.slane %v2193_v51, 3 }
 0x2f6   : > { %v1682_v32 = vadd.f32 1.0, %v2456_v10  ;;  %2277 = vmatmul.mubr.bf16.gmra.mxu1 %v1706_v39  ;;  %v1700_v11 = vmul.f32 %v1684_v18, %v1636_v35  ;;  %v2190_v10 = vld [vmem:[%s3625_s14 + $0xc0] sm:$0xff] }
 0x2f8   : > { %v1698_v48 = vmul.f32 %v1682_v32, %v1634_v46  ;;  %v1708_v15 = vpack.c.bf16 %v1700_v11, %v1699_v49  ;;  %v1939_v46 = vrot.slane %v2183_v33, 3  ;;  %v2187_v11 = vld [vmem:[%s3625_s14 + $0xa8] sm:$0xff]  ;;  %v1945_v49 = vsel %vm605_vm3, %v1942_v36, %v1944_v24 }
 0x2fa   : > { %v1707_v58 = vpack.c.bf16 %v1698_v48, %v1697_v62  ;;  %v2188_v48 = vld [vmem:[%s3625_s14 + $0xb0] sm:$0xff]  ;;  %v1940_v59 = vsel %vm605_vm3, %v1937_v6, %v1939_v46  ;;  %v1957_v6 = vrot.slane %v2194_v28, 3 }
 0x2fb   : > { %v1947_v60 = vrot.slane %v2188_v48, 3 }
 0x2fc   : > { %2280 = vmatprep.mubr.bf16.mxu1 %v1707_v58 }
 0x2fe   : > { %2281 = vmatmul.mubr.bf16.gmra.mxu1 %v1708_v15  ;;  %v1951_v15 = vrot.slane %v2190_v10, 3 }
 0x3a5   : > { %v2270_v23 = vpop.f32.mrf.mxu0 }
 0x3a6   : > { %v1820_v57 = vadd.f32 %v2270_v23, %v3634_v50  ;;  %v1946_v23 = vrot.slane %v2187_v11, 3 }
 0x3a7   : > { %v1811_v0 = vpop.f32.mrf.mxu0 }
 0x3a8   : > { %v1988_v5 = vmul.f32 %v3640_v56, %v1820_v57  ;;  %v1812_v19 = vadd.f32 %v3634_v50, %v1811_v0  ;;  %v1953_v0 = vsel %vm605_vm3, %v1951_v15, %v1952_v13  ;;  %v1948_v47 = vsel %vm605_vm3, %v1946_v23, %v1947_v60 }
 0x3a9   : > { %v2271_v38 = vpop.f32.mrf.mxu0 }
 0x3aa   : > { %v2004_v61 = vadd.f32 %v1988_v5, %v1933_v4  ;;  %v1986_v8 = vmul.f32 %v3640_v56, %v1812_v19  ;;  %v1823_v25 = vadd.f32 %v2271_v38, %v3634_v50  ;;  %v2189_v4 = vld [vmem:[%s3625_s14 + $0xb8] sm:$0xff]  ;;  %v1954_v5 = vrot.slane %v2192_v53, 3  ;;  %v2196_v38 = vld [vmem:[%s3625_s14 + $0xf0] sm:$0xff] }
 0x3ab   : > { %v1814_v12 = vpop.f32.mrf.mxu0 }
 0x3ac   : > { %2020 = vst.msk [vmem:[%s2704_s30 + $0x10] sm:$0xff] %vm240_vm0, %v2004_v61  ;;  %v2002_v37 = vadd.f32 %v1986_v8, %v1928_v14  ;;  %v1989_v40 = vmul.f32 %v3640_v56, %v1823_v25  ;;  %v1815_v7 = vadd.f32 %v3634_v50, %v1814_v12  ;;  %v1949_v8 = vrot.slane %v2189_v4, 3 }
 0x3ad   : > { %v2274_v17 = vpop.f32.mrf.mxu1  ;;  %v1955_v16 = vsel %vm605_vm3, %v1952_v13, %v1954_v5 }
 0x3ae   : > { %2018 = vst.msk [vmem:[%s2704_s30] sm:$0xff] %vm240_vm0, %v2002_v37  ;;  %v2005_v41 = vadd.f32 %v1989_v40, %v1935_v21  ;;  %v1987_v30 = vmul.f32 %v3640_v56, %v1815_v7  ;;  %v1836_v27 = vadd.f32 %v2274_v17, %v3634_v50  ;;  %v1961_v40 = vrot.slane %v2196_v38, 3 }
 0x3af   : > { %v1827_v29 = vpop.f32.mrf.mxu1  ;;  %v1962_v7 = vrot.slane %v2197_v2, 3 }
 0x3b0   : > { %2021 = vst.msk [vmem:[%s2704_s30 + $0x18] sm:$0xff] %vm240_vm0, %v2005_v41  ;;  %v2003_v34 = vadd.f32 %v1987_v30, %v1930_v22  ;;  %v1992_v18 = vmul.f32 %v3640_v56, %v1836_v27  ;;  %v1828_v39 = vadd.f32 %v3634_v50, %v1827_v29  ;;  %v2198_v41 = vld [vmem:[%s3625_s14 + $0x100] sm:$0xff]  ;;  %v1950_v30 = vsel %vm605_vm3, %v1947_v60, %v1949_v8 }
 0x3b1   : > { %v2275_v35 = vpop.f32.mrf.mxu1  ;;  %v1963_v29 = vsel %vm605_vm3, %v1961_v40, %v1962_v7 }
 0x3b2   : > { %2019 = vst.msk [vmem:[%s2704_s30 + $0x8] sm:$0xff] %vm240_vm0, %v2003_v34  ;;  %v2008_v32 = vadd.f32 %v1992_v18, %v1943_v55  ;;  %v1990_v44 = vmul.f32 %v3640_v56, %v1828_v39  ;;  %v1839_v62 = vadd.f32 %v2275_v35, %v3634_v50  ;;  %v2195_v55 = vld [vmem:[%s3625_s14 + $0xe8] sm:$0xff]  ;;  %v1964_v18 = vrot.slane %v2198_v41, 3  ;;  %s3743_s14 = scalar_lea.hbm %s3809_s5, %s2203_s22 }
 0x3b3   : > { %v1830_v58 = vpop.f32.mrf.mxu1  ;;  %v1959_v46 = vrot.slane %v2195_v55, 3 }
 0x3b4   : > { %2024 = vst.msk [vmem:[%s2704_s30 + $0x30] sm:$0xff] %vm240_vm0, %v2008_v32  ;;  %v2006_v52 = vadd.f32 %v1990_v44, %v1938_v9  ;;  %v1993_v42 = vmul.f32 %v3640_v56, %v1839_v62  ;;  %v1831_v45 = vadd.f32 %v3634_v50, %v1830_v58  ;;  %v1958_v9 = vsel %vm605_vm3, %v1956_v1, %v1957_v6 }
 0x3b5   : > { %v1965_v11 = vsel %vm605_vm3, %v1962_v7, %v1964_v18  ;;  %v1960_v13 = vsel %vm605_vm3, %v1957_v6, %v1959_v46 }
 0x3b6   : > { %v2278_v26 = vpop.f32.mrf.mxu1  ;;  %2022 = vst.msk [vmem:[%s2704_s30 + $0x20] sm:$0xff] %vm240_vm0, %v2006_v52  ;;  %v2009_v3 = vadd.f32 %v1993_v42, %v1945_v49  ;;  %v1991_v57 = vmul.f32 %v3640_v56, %v1831_v45 }
 0x3b7   : > { %v1852_v63 = vadd.f32 %v2278_v26, %v3634_v50 }
 0x3b8   : > { %v1843_v54 = vpop.f32.mrf.mxu1  ;;  %2025 = vst.msk [vmem:[%s2704_s30 + $0x38] sm:$0xff] %vm240_vm0, %v2009_v3  ;;  %v2007_v19 = vadd.f32 %v1991_v57, %v1940_v59 }
 0x3b9   : > { %v1996_v31 = vmul.f32 %v3640_v56, %v1852_v63  ;;  %v1844_v14 = vadd.f32 %v3634_v50, %v1843_v54 }
 0x3ba   : > { %v2279_v61 = vpop.f32.mrf.mxu1  ;;  %2023 = vst.msk [vmem:[%s2704_s30 + $0x28] sm:$0xff] %vm240_vm0, %v2007_v19 }
 0x3bb   : > { %v2012_v25 = vadd.f32 %v1996_v31, %v1953_v0  ;;  %v1994_v21 = vmul.f32 %v3640_v56, %v1844_v14  ;;  %v1855_v12 = vadd.f32 %v2279_v61, %v3634_v50 }
 0x3bc   : > { %v1846_v37 = vpop.f32.mrf.mxu1 }
 0x3bd   : > { %2028 = vst.msk [vmem:[%s2704_s30 + $0x50] sm:$0xff] %vm240_vm0, %v2012_v25  ;;  %v2010_v36 = vadd.f32 %v1994_v21, %v1948_v47  ;;  %v1997_v22 = vmul.f32 %v3640_v56, %v1855_v12  ;;  %v1847_v43 = vadd.f32 %v3634_v50, %v1846_v37 }
 0x3be   : > { %v2282_v17 = vpop.f32.mrf.mxu1 }
 0x3bf   : > { %2026 = vst.msk [vmem:[%s2704_s30 + $0x40] sm:$0xff] %vm240_vm0, %v2010_v36  ;;  %v2013_v27 = vadd.f32 %v1997_v22, %v1955_v16  ;;  %v1995_v33 = vmul.f32 %v3640_v56, %v1847_v43  ;;  %v1868_v34 = vadd.f32 %v2282_v17, %v3634_v50 }
 0x3c0   : > { %v1859_v24 = vpop.f32.mrf.mxu1 }
 0x3c1   : > { %2029 = vst.msk [vmem:[%s2704_s30 + $0x58] sm:$0xff] %vm240_vm0, %v2013_v27  ;;  %v2011_v39 = vadd.f32 %v1995_v33, %v1950_v30  ;;  %v2000_v10 = vmul.f32 %v3640_v56, %v1868_v34  ;;  %v1860_v20 = vadd.f32 %v3634_v50, %v1859_v24 }
 0x3c2   : > { %v2283_v35 = vpop.f32.mrf.mxu1 }
 0x3c3   : > { %2027 = vst.msk [vmem:[%s2704_s30 + $0x48] sm:$0xff] %vm240_vm0, %v2011_v39  ;;  %v2016_v32 = vadd.f32 %v2000_v10, %v1963_v29  ;;  %v1998_v44 = vmul.f32 %v3640_v56, %v1860_v20  ;;  %v1871_v62 = vadd.f32 %v2283_v35, %v3634_v50 }
 0x3c4   : > { %v1862_v48 = vpop.f32.mrf.mxu1 }
 0x3c5   : > { %2032 = vst.msk [vmem:[%s2704_s30 + $0x70] sm:$0xff] %vm240_vm0, %v2016_v32  ;;  %v2014_v49 = vadd.f32 %v1998_v44, %v1958_v9  ;;  %v2001_v58 = vmul.f32 %v3640_v56, %v1871_v62  ;;  %v1863_v15 = vadd.f32 %v3634_v50, %v1862_v48 }
 0x3c7   : > { %2030 = vst.msk [vmem:[%s2704_s30 + $0x60] sm:$0xff] %vm240_vm0, %v2014_v49  ;;  %v2017_v52 = vadd.f32 %v2001_v58, %v1965_v11  ;;  %v1999_v42 = vmul.f32 %v3640_v56, %v1863_v15 }
 0x3c9   : > { %2033 = vst.msk [vmem:[%s2704_s30 + $0x78] sm:$0xff] %vm240_vm0, %v2017_v52  ;;  %v2015_v50 = vadd.f32 %v1999_v42, %v1960_v13 }
 0x3cb   : > { %2031 = vst.msk [vmem:[%s2704_s30 + $0x68] sm:$0xff] %vm240_vm0, %v2015_v50 }
 0x3cc   : > { %2470 = shalt.err (!%p2467_p7)
}
 0x3cd   : > { %s2471_s12 = scalar_lea.hbm %s3743_s14, 2048  ;;  %s2475_s21 = scalar_lea.hbm %s3809_s5, 8192 }
 0x3ce   : > { %p2472_p9 = scmp.ne.s32.totalorder %s3743_s14, %s2471_s12  ;;  %p2476_p12 = scmp.lt.s32.totalorder %s3743_s14, %s3809_s5 }
 0x3cf   : > { %p2477_p13 = scmp.lt.s32.totalorder %s2475_s21, %s2471_s12 }
 0x3d0   : > { %p2473_p10 = pnand %p2472_p9, %p2644_p3 }
 0x3d1   : > { %p2478_p0 = por %p2477_p13, %p2476_p12 }
 0x3d2   : > { %p2474_p11 = pneg %p2473_p10 }
 0x3d4   : > { %p2479_p1 = pnand %p2478_p0, %p2474_p11 }
 0x3d6   : > { %2482 = shalt.err (!%p2479_p1)
}
 0x3d7   : > { %s2561_s10 = smov 128   ;;  %s2562_s15 = smov 8  }
 0x3d8   : > { %2301 = dma.vmem_to_hbm [thread:$0]  (%p2644_p3), %s3745_s26, 2048, %s3743_s14, %s3753_s8, %s2561_s10, %s2561_s10, %s2562_s15  }
 0x3d9 PF: > { %p2307_p2 = scmp.ge.s32.totalorder %s2553_s25, 2  ;;  %s2065_s27 = sand.u32 1, %s2525_s18  }
 0x3da   : > { %s2066_s13 = scalar_lea.sflag [#allocation4], %s2065_s27 }
 0x3db   : > { %p2304_p4 = pnand %p2307_p2, %p2653_p8 }
 0x3dd   : > { %p2305_p5 = pneg %p2304_p4 }
 0x3df   : > { %2520 = dma.done.wait (%p2305_p5), %s2066_s13, 2048  }
 0x3e0   : > { %2522 = vsyncadd (%p2305_p5), %s2066_s13, 4294965248  ;;  %s18_s25 = sadd.s32 1, %s2553_s25   ;;  %s3812_s18 = smov %s2529_s19 }
 0x3e1   : > { %p15_p6 = scmp.ge.s32.totalorder %s18_s25, 6   ;;  %s3813_s19 = smov %s2533_s20 }
 0x3e2   : > { %s3814_s20 = smov %s2662_s11  ;;  %s3815_s21 = smov %s2545_s23 }
 0x3e3   : > { %s3816_s22 = smov %s2549_s24  ;;  %s3817_s23 = smov %s3820_s28 }
 0x3e4   : > { %s3818_s24 = smov %s3824_s29  ;;  %17 = sbr.rel (!%p15_p6) target bundleno = 5 (0x5), region = 96 }
 0x3e9   :  { %2071 = vsyncpa [#allocation4], 1 }
 0x3ea   :  { %2073 = vsyncpa [#allocation4 + $0x1], 1 }

</bundles_post_ra>
